<compile_context>
chip_gen: v5e
topology: v5e:2x2
jax: 0.10.0
libtpu: 0.0.40
codegen_flags: <defaults>
</compile_context>

<pallas_src>
import numpy as np
import jax
import jax.numpy as jnp
from jax import lax
from jax.experimental import pallas as pl
from jax.experimental.pallas import tpu as pltpu


# --------------------------------------------------------------------------
# Static helpers (trace-time operator construction, wrapper side)
# --------------------------------------------------------------------------
def _bilinear_upsample_matrix_2x(n):
    """(2n, n) matrix reproducing nn.Upsample(scale=2, mode='bilinear',
    align_corners=False) along one axis (PyTorch source-index convention)."""
    o = np.arange(2 * n)
    src = np.maximum((o + 0.5) / 2.0 - 0.5, 0.0)        # clamp negative src
    i0 = np.floor(src).astype(np.int64)
    frac = (src - i0).astype(np.float32)
    i1 = np.minimum(i0 + 1, n - 1)
    u = np.zeros((2 * n, n), np.float32)
    u[o, i0] += 1.0 - frac
    u[o, i1] += frac
    return u


def _shift_selector(width):
    """S[kx, w_in, w_out] = 1 iff w_in == w_out + kx - 1 (zero-padded 3-tap conv)."""
    s = np.zeros((3, width, width), np.float32)
    for kx in range(3):
        for w_out in range(width):
            w_in = w_out + kx - 1
            if 0 <= w_in < width:
                s[kx, w_in, w_out] = 1.0
    return s


def _banded_conv3x3_weights(w_hwio, width):
    """Fold the (kx, Cin) taps of a 3x3 conv into banded block matrices.

    w_hwio: (3, 3, Cin, Cout).  Returns band (3, width*Cin, width*Cout) such that,
    in the flattened (rows=H, lanes=W*C) layout,
        conv3x3(x, w)[h, :] == sum_ky  x[h + ky - 1, :] @ band[ky]
    with out-of-image rows treated as zero.
    """
    _, _, cin, cout = w_hwio.shape
    sel = jnp.asarray(_shift_selector(width))              # (3, W, W): [kx, w_in, w_out]
    band = jnp.einsum('xio,yxcf->yicof', sel, w_hwio)      # (3, W, Cin, W, Cout)
    return band.reshape(3, width * cin, width * cout)      # f32


def _pack_ky_taps(band):
    """(3, K, L) -> (K, 3*L): ky taps packed along the matmul N dimension."""
    k, l = band.shape[1], band.shape[2]
    return jnp.transpose(band, (1, 0, 2)).reshape(k, 3 * l)


def _tile_channel_vec(v, width):
    """(C,) per-channel vector -> (1, width*C) row matching the (W*C) lane layout."""
    return jnp.tile(v, width).reshape(1, width * v.shape[0]).astype(jnp.float32)


def _choose_batch_tile(n, hi, ho, max_rows=256):
    """Largest batch tile whose stacked row count stays MXU-friendly (<= max_rows),
    keeps activation blocks sublane-divisible, and leaves grid extent >= 2 so both
    v7x TensorCores get work (v5e/v6e: only affects pipelining)."""
    cands = [d for d in range(1, n + 1)
             if n % d == 0 and (d * hi) % 8 == 0 and (d * ho) % 8 == 0]
    if not cands:                       # pathological odd shapes: one full-array step
        return n
    small = [d for d in cands if d * ho <= max_rows]
    pool = small if small else [min(cands)]
    pref = [d for d in pool if n // d >= 2]
    return max(pref) if pref else max(pool)


# --------------------------------------------------------------------------
# The fused Pallas kernel (TB batch elements per grid step, all in VMEM)
# --------------------------------------------------------------------------
def _upconv_fused_kernel(x_ref, skip_ref, uhb_ref, kup_ref, bup_ref,
                         w1_ref, b1_ref, s1_ref, t1_ref,
                         w2_ref, b2_ref, s2_ref, t2_ref,
                         sdn_ref, sup_ref, o_ref):
    """Fused UpConvBlock forward for TB stacked batch elements.

    x_ref    : (TB*Hi, Wi*Ci)      stacked input rows (W,C flattened to lanes), f32
    skip_ref : (TB*Ho, Wo*Co)      stacked skip rows, compute dtype
    uhb_ref  : (TB*Ho, TB*Hi)      block-diag bilinear row-upsample, f32
    kup_ref  : (Wi*Ci, Wo*Co)      kron(Uw^T, W_up): col-upsample fused w/ 1x1 conv, f32
    bup_ref  : (1, Wo*Co)          1x1-conv bias, tiled over Wo
    w1_ref   : (2*Wo*Co, 3*Wo*Co)  layer-1 banded weights: [up; skip] merged along K,
                                   ky taps packed along N, compute dtype
    b1,s1,t1 : (1, Wo*Co)          conv1 bias / BN1 scale / BN1 shift (tiled, f32)
    w2_ref   : (Wo*Co, 3*Wo*Co)    layer-2 banded weights (ky packed along N)
    b2,s2,t2 : (1, Wo*Co)
    sdn_ref  : (TB*Ho, TB*Ho)      block-diag row-down-shift (zero at first-of-image rows)
    sup_ref  : (TB*Ho, TB*Ho)      block-diag row-up-shift   (zero at last-of-image rows)
    o_ref    : (TB*Ho, Wo*Co)
    """
    f32 = jnp.float32
    lanes = o_ref.shape[-1]                  # Wo * Co
    cdt = w1_ref.dtype                       # compute dtype for the MXU weights

    def mm(a, b):
        return jnp.dot(a, b, preferred_element_type=f32)

    def conv3x3(inp_cdt, w_ref):
        # inp_cdt: (R, K) already in the weight dtype.  ONE lane-dense dot produces
        # all three ky-tap outputs (N = 3*lanes); lane-aligned (128-multiple) splits,
        # then the +-1 row shift (with per-image zero boundaries) is applied with the
        # tiny static shift matrices -- no misaligned sublane slices or row concats.
        y = mm(inp_cdt, w_ref[...])                          # (R, 3*lanes) f32
        y0 = y[:, 0:lanes]                                   # ky=0 -> needs row h-1
        y1 = y[:, lanes:2 * lanes]                           # ky=1 -> row h
        y2 = y[:, 2 * lanes:3 * lanes]                       # ky=2 -> needs row h+1
        out = y1
        out = out + mm(sdn_ref[...], y0.astype(cdt))         # out[h] += y0[h-1]
        out = out + mm(sup_ref[...], y2.astype(cdt))         # out[h] += y2[h+1]
        return out                                           # (R, lanes) f32

    x2d = x_ref[...]                                         # (TB*Hi, Wi*Ci) f32
    skip2d = skip_ref[...]                                   # (TB*Ho, Wo*Co) cdt

    # --- UpsampleBlock: bilinear 2x rows (block-diag matmul), then fused
    #     [bilinear 2x cols + conv1x1] (kron weight).  Interpolation kept f32. ---
    xr = mm(uhb_ref[...], x2d)                               # (R, Wi*Ci) f32
    up = mm(xr, kup_ref[...]) + bup_ref[...]                 # (R, Wo*Co) f32

    # --- channel concat folded along lanes; activations cast to weight dtype once ---
    cat = jnp.concatenate([up.astype(cdt), skip2d], axis=-1)  # (R, 2*Wo*Co) cdt

    # --- ConvBlock layer 1: conv3x3 -> bias -> ReLU -> BN(eval) ---
    h1 = conv3x3(cat, w1_ref) + b1_ref[...]
    h1 = jnp.maximum(h1, 0.0) * s1_ref[...] + t1_ref[...]

    # --- ConvBlock layer 2 ---
    h2 = conv3x3(h1.astype(cdt), w2_ref) + b2_ref[...]
    h2 = jnp.maximum(h2, 0.0) * s2_ref[...] + t2_ref[...]

    o_ref[...] = h2.astype(o_ref.dtype)                      # single lane-dense store


# --------------------------------------------------------------------------
# Wrapper: parameter folding + pallas_call
# --------------------------------------------------------------------------
def upconv_block_forward(params, x, skip, *, compute_dtype=jnp.bfloat16,
                         out_dtype=jnp.float32, batch_tile=None):
    """UpConvBlock.forward (up_mode='up_conv', conv_bridge=False, shortcut=False).

    x: (N, H, W, in_c), skip: (N, 2H, 2W, out_c)  ->  (N, 2H, 2W, out_c).
    compute_dtype: dtype of the banded conv weights / conv activations (bf16 is
      MXU-native on v5e/v6e/v7x; accumulation is always f32; interpolation
      operators stay f32).  out_dtype=bf16 halves the writeback DMA if the
      downstream consumer tolerates it.
    """
    n, hi, wi, ci = x.shape
    ho, wo = 2 * hi, 2 * wi
    co = params['w_up'].shape[1]
    assert skip.shape == (n, ho, wo, co), skip.shape

    tb = _choose_batch_tile(n, hi, ho) if batch_tile is None else batch_tile
    assert n % tb == 0, (n, tb)
    grid_n = n // tb
    r_in, r_out = tb * hi, tb * ho           # stacked row counts per grid step
    l_in, l_out = wi * ci, wo * co           # lane widths

    # --- static bilinear-2x operators (align_corners=False), kept f32 ---
    uh = _bilinear_upsample_matrix_2x(hi)                                # (Ho, Hi)
    uhb = jnp.asarray(np.kron(np.eye(tb, dtype=np.float32), uh))         # (R, R_in)
    uw = _bilinear_upsample_matrix_2x(wi)                                # (Wo, Wi)
    kup = jnp.einsum('vw,io->wivo', jnp.asarray(uw), params['w_up'])
    kup = kup.reshape(l_in, l_out).astype(jnp.float32)                   # (Wi*Ci, Wo*Co)

    # --- static per-image row-shift matrices (block-diag => no cross-image leak) ---
    sdn = jnp.asarray(np.kron(np.eye(tb, dtype=np.float32),
                              np.eye(ho, k=-1, dtype=np.float32))).astype(compute_dtype)
    sup = jnp.asarray(np.kron(np.eye(tb, dtype=np.float32),
                              np.eye(ho, k=1, dtype=np.float32))).astype(compute_dtype)

    # --- banded 3x3 weights: (kx, Cin) folded into K; the [up, skip] channel-concat
    #     halves merged along K (order matches torch.cat([up, skip])); ky packed
    #     along N so each conv layer is one dot. ---
    band_u = _banded_conv3x3_weights(params['w1'][:, :, :co, :], wo)     # (3, L, L)
    band_s = _banded_conv3x3_weights(params['w1'][:, :, co:, :], wo)     # (3, L, L)
    band1 = jnp.concatenate([band_u, band_s], axis=1)                    # (3, 2L, L)
    w1p = _pack_ky_taps(band1).astype(compute_dtype)                     # (2L, 3L)
    w2p = _pack_ky_taps(_banded_conv3x3_weights(params['w2'], wo)).astype(compute_dtype)

    # --- per-channel vectors tiled to the flattened (W*C) lane layout (f32) ---
    bup = _tile_channel_vec(params['b_up'], wo)
    b1 = _tile_channel_vec(params['b1'], wo)
    s1 = _tile_channel_vec(params['bn1_scale'], wo)
    t1 = _tile_channel_vec(params['bn1_shift'], wo)
    b2 = _tile_channel_vec(params['b2'], wo)
    s2 = _tile_channel_vec(params['bn2_scale'], wo)
    t2 = _tile_channel_vec(params['bn2_shift'], wo)

    # --- flatten (W, C) into lanes and stack batch rows (free, contiguous reshape) ---
    x2 = x.reshape(n * hi, l_in).astype(jnp.float32)          # f32 (feeds f32 interp)
    sk2 = skip.reshape(n * ho, l_out).astype(compute_dtype)   # ship skip in compute dtype

    def const_spec(shape):
        return pl.BlockSpec(shape, lambda b: (0,) * len(shape))

    out = pl.pallas_call(
        _upconv_fused_kernel,
        out_shape=jax.ShapeDtypeStruct((n * ho, l_out), out_dtype),
        grid=(grid_n,),
        in_specs=[
            pl.BlockSpec((r_in, l_in), lambda b: (b, 0)),      # x (TB stacked images)
            pl.BlockSpec((r_out, l_out), lambda b: (b, 0)),    # skip
            const_spec((r_out, r_in)),                         # UhB  (block-diag row upsample)
            const_spec((l_in, l_out)),                         # Kup  (col upsample + 1x1)
            const_spec((1, l_out)),                            # bup
            const_spec((2 * l_out, 3 * l_out)),                # W1 (K-merged, ky N-packed)
            const_spec((1, l_out)),                            # b1
            const_spec((1, l_out)),                            # bn1 scale
            const_spec((1, l_out)),                            # bn1 shift
            const_spec((l_out, 3 * l_out)),                    # W2 (ky N-packed)
            const_spec((1, l_out)),                            # b2
            const_spec((1, l_out)),                            # bn2 scale
            const_spec((1, l_out)),                            # bn2 shift
            const_spec((r_out, r_out)),                        # S_down
            const_spec((r_out, r_out)),                        # S_up
        ],
        out_specs=pl.BlockSpec((r_out, l_out), lambda b: (b, 0)),
        compiler_params=pltpu.CompilerParams(
            # Batch-group grid, independent per step: both v7x TCs get work when
            # grid_n >= 2 (the default batch-tile chooser prefers that).
            dimension_semantics=("parallel",),
            # Explicit budget, within the scoped default on v5e/v6e/v7x.
            vmem_limit_bytes=32 * 1024 * 1024,
        ),
    )(x2, sk2, uhb, kup, bup, w1p, b1, s1, t1, w2p, b2, s2, t2, sdn, sup)

    return out.reshape(n, ho, wo, co)


# --------------------------------------------------------------------------
# Plain-JAX reference (same math, no Pallas) for a numerical self-check
# --------------------------------------------------------------------------
def upconv_block_reference(params, x, skip):
    n, hi, wi, ci = x.shape
    uh = jnp.asarray(_bilinear_upsample_matrix_2x(hi))
    uw = jnp.asarray(_bilinear_upsample_matrix_2x(wi))
    up = jnp.einsum('oh,nhwc->nowc', uh, x)
    up = jnp.einsum('pw,nowc->nopc', uw, up)
    up = jnp.einsum('nhwc,cd->nhwd', up, params['w_up']) + params['b_up']
    out = jnp.concatenate([up, skip], axis=-1)

    def conv_relu_bn(h, w, b, sc, sh):
        y = lax.conv_general_dilated(h, w, (1, 1), ((1, 1), (1, 1)),
                                     dimension_numbers=('NHWC', 'HWIO', 'NHWC')) + b
        y = jnp.maximum(y, 0.0)          # Conv -> ReLU -> BN (matches ConvBlock)
        return y * sc + sh

    h1 = conv_relu_bn(out, params['w1'], params['b1'],
                      params['bn1_scale'], params['bn1_shift'])
    h2 = conv_relu_bn(h1, params['w2'], params['b2'],
                      params['bn2_scale'], params['bn2_shift'])
    return h2


# --------------------------------------------------------------------------
# Parameters
# --------------------------------------------------------------------------
def init_params(key, in_c, out_c):
    ks = jax.random.split(key, 12)

    def nrm(k, shape, s=0.1):
        return (jax.random.normal(k, shape) * s).astype(jnp.float32)

    p = {}
    # UpsampleBlock('up_conv'): bilinear x2 then Conv2d(in_c, out_c, 1, bias=True)
    p['w_up'] = nrm(ks[0], (in_c, out_c))
    p['b_up'] = nrm(ks[1], (out_c,))
    # ConvBlock(2*out_c, out_c, k=3, pool=False, shortcut=False); weights in HWIO
    p['w1'] = nrm(ks[2], (3, 3, 2 * out_c, out_c))
    p['b1'] = nrm(ks[3], (out_c,))
    p['w2'] = nrm(ks[4], (3, 3, out_c, out_c))
    p['b2'] = nrm(ks[5], (out_c,))
    # eval-mode BatchNorm folded into per-channel scale/shift
    eps = 1e-5
    for i, tag in enumerate(('bn1', 'bn2')):
        gamma = 1.0 + nrm(ks[6 + 3 * i], (out_c,))
        beta = nrm(ks[7 + 3 * i], (out_c,))
        r_mean = nrm(ks[8 + 3 * i], (out_c,))
        r_var = jnp.ones((out_c,), jnp.float32)
        scale = gamma / jnp.sqrt(r_var + eps)
        p[tag + '_scale'] = scale
        p[tag + '_shift'] = beta - r_mean * scale
    return p


if __name__ == '__main__':
    key = jax.random.PRNGKey(0)
    kx, ksk, kp = jax.random.split(key, 3)

    in_c, out_c = 8, 4
    n, h, w = 8, 16, 16                  # upsamples to 32x32; Wi*Ci = Wo*Co = 128 lanes
    # batch tile of 4 -> M = 128 stacked rows per dot, grid = 2 (both v7x TCs busy)
    x = jax.random.normal(kx, (n, h, w, in_c), dtype=jnp.float32)
    skip = jax.random.normal(ksk, (n, 2 * h, 2 * w, out_c), dtype=jnp.float32)
    params = init_params(kp, in_c, out_c)

    fwd = jax.jit(upconv_block_forward)
    y = fwd(params, x, skip)
    jax.block_until_ready(y)
    assert y.shape == (n, 2 * h, 2 * w, out_c), y.shape
    assert y.dtype == jnp.float32

    # Numerical self-check against plain JAX.  Tolerance covers bf16 conv weights /
    # activations in the kernel and the TPU default matmul/conv precision in XLA.
    y_ref = jax.jit(upconv_block_reference)(params, x, skip)
    np.testing.assert_allclose(np.asarray(y), np.asarray(y_ref), rtol=3e-2, atol=3e-2)

    print("KERNEL_OK")
</pallas_src>

<mosaic_0001>
module attributes {stable_mosaic.version = 11 : i64} {
  func.func @_upconv_fused_kernel(%arg0: i32, %arg1: memref<64x128xf32, #tpu.memory_space<vmem>>, %arg2: memref<128x128xbf16, #tpu.memory_space<vmem>>, %arg3: memref<128x64xf32, #tpu.memory_space<vmem>>, %arg4: memref<128x128xf32, #tpu.memory_space<vmem>>, %arg5: memref<1x128xf32, #tpu.memory_space<vmem>>, %arg6: memref<256x384xbf16, #tpu.memory_space<vmem>>, %arg7: memref<1x128xf32, #tpu.memory_space<vmem>>, %arg8: memref<1x128xf32, #tpu.memory_space<vmem>>, %arg9: memref<1x128xf32, #tpu.memory_space<vmem>>, %arg10: memref<128x384xbf16, #tpu.memory_space<vmem>>, %arg11: memref<1x128xf32, #tpu.memory_space<vmem>>, %arg12: memref<1x128xf32, #tpu.memory_space<vmem>>, %arg13: memref<1x128xf32, #tpu.memory_space<vmem>>, %arg14: memref<128x128xbf16, #tpu.memory_space<vmem>>, %arg15: memref<128x128xbf16, #tpu.memory_space<vmem>>, %arg16: memref<128x128xf32, #tpu.memory_space<vmem>>) attributes {dimension_semantics = [#tpu.dimension_semantics<parallel>], iteration_bounds = array<i64: 2>, scalar_prefetch = 0 : i64, scratch_operands = 0 : i64, tpu.core_type = #tpu.core_type<tc>, window_params = [{transform_indices = @transform_0, window_bounds = array<i64: 64, 128>}, {transform_indices = @transform_1, window_bounds = array<i64: 128, 128>}, {pipeline_mode = #tpu.pipeline_mode<synchronous>, transform_indices = @transform_2, window_bounds = array<i64: 128, 64>}, {pipeline_mode = #tpu.pipeline_mode<synchronous>, transform_indices = @transform_3, window_bounds = array<i64: 128, 128>}, {pipeline_mode = #tpu.pipeline_mode<synchronous>, transform_indices = @transform_4, window_bounds = array<i64: 1, 128>}, {pipeline_mode = #tpu.pipeline_mode<synchronous>, transform_indices = @transform_5, window_bounds = array<i64: 256, 384>}, {pipeline_mode = #tpu.pipeline_mode<synchronous>, transform_indices = @transform_6, window_bounds = array<i64: 1, 128>}, {pipeline_mode = #tpu.pipeline_mode<synchronous>, transform_indices = @transform_7, window_bounds = array<i64: 1, 128>}, {pipeline_mode = #tpu.pipeline_mode<synchronous>, transform_indices = @transform_8, window_bounds = array<i64: 1, 128>}, {pipeline_mode = #tpu.pipeline_mode<synchronous>, transform_indices = @transform_9, window_bounds = array<i64: 128, 384>}, {pipeline_mode = #tpu.pipeline_mode<synchronous>, transform_indices = @transform_10, window_bounds = array<i64: 1, 128>}, {pipeline_mode = #tpu.pipeline_mode<synchronous>, transform_indices = @transform_11, window_bounds = array<i64: 1, 128>}, {pipeline_mode = #tpu.pipeline_mode<synchronous>, transform_indices = @transform_12, window_bounds = array<i64: 1, 128>}, {pipeline_mode = #tpu.pipeline_mode<synchronous>, transform_indices = @transform_13, window_bounds = array<i64: 128, 128>}, {pipeline_mode = #tpu.pipeline_mode<synchronous>, transform_indices = @transform_14, window_bounds = array<i64: 128, 128>}, {transform_indices = @transform_15, window_bounds = array<i64: 128, 128>}]} {
    %c0 = arith.constant 0 : index
    %c0_0 = arith.constant 0 : index
    %0 = vector.load %arg1[%c0, %c0_0] : memref<64x128xf32, #tpu.memory_space<vmem>>, vector<64x128xf32>
    %c0_1 = arith.constant 0 : index
    %c0_2 = arith.constant 0 : index
    %1 = vector.load %arg2[%c0_1, %c0_2] : memref<128x128xbf16, #tpu.memory_space<vmem>>, vector<128x128xbf16>
    %c0_3 = arith.constant 0 : index
    %c0_4 = arith.constant 0 : index
    %2 = vector.load %arg3[%c0_3, %c0_4] : memref<128x64xf32, #tpu.memory_space<vmem>>, vector<128x64xf32>
    %cst = arith.constant dense<0.000000e+00> : vector<128x128xf32>
    %3 = tpu.matmul %2, %0, %cst {dimension_numbers = #tpu.dot_dimension_numbers<[1], [0], [0], [1], [0, 0, 1, 1], [], []>} : vector<128x64xf32>, vector<64x128xf32>, vector<128x128xf32> -> vector<128x128xf32>
    %c0_5 = arith.constant 0 : index
    %c0_6 = arith.constant 0 : index
    %4 = vector.load %arg4[%c0_5, %c0_6] : memref<128x128xf32, #tpu.memory_space<vmem>>, vector<128x128xf32>
    %cst_7 = arith.constant dense<0.000000e+00> : vector<128x128xf32>
    %5 = tpu.matmul %3, %4, %cst_7 {dimension_numbers = #tpu.dot_dimension_numbers<[1], [0], [0], [1], [0, 0, 1, 1], [], []>} : vector<128x128xf32>, vector<128x128xf32>, vector<128x128xf32> -> vector<128x128xf32>
    %c0_8 = arith.constant 0 : index
    %c0_9 = arith.constant 0 : index
    %6 = vector.load %arg5[%c0_8, %c0_9] : memref<1x128xf32, #tpu.memory_space<vmem>>, vector<1x128xf32>
    %7 = vector.broadcast %6 : vector<1x128xf32> to vector<128x128xf32>
    %8 = arith.addf %5, %7 : vector<128x128xf32>
    %9 = arith.truncf %8 : vector<128x128xf32> to vector<128x128xbf16>
    %10 = tpu.concatenate %9, %1 in 1 : vector<128x128xbf16>, vector<128x128xbf16> -> vector<128x256xbf16>
    %c0_10 = arith.constant 0 : index
    %c0_11 = arith.constant 0 : index
    %11 = vector.load %arg6[%c0_10, %c0_11] : memref<256x384xbf16, #tpu.memory_space<vmem>>, vector<256x384xbf16>
    %cst_12 = arith.constant dense<0.000000e+00> : vector<128x384xf32>
    %12 = tpu.matmul %10, %11, %cst_12 {dimension_numbers = #tpu.dot_dimension_numbers<[1], [0], [0], [1], [0, 0, 1, 1], [], []>} : vector<128x256xbf16>, vector<256x384xbf16>, vector<128x384xf32> -> vector<128x384xf32>
    %13 = vector.extract_strided_slice %12 {offsets = [0, 0], sizes = [128, 128], strides = [1, 1]} : vector<128x384xf32> to vector<128x128xf32>
    %14 = vector.extract_strided_slice %12 {offsets = [0, 128], sizes = [128, 128], strides = [1, 1]} : vector<128x384xf32> to vector<128x128xf32>
    %15 = vector.extract_strided_slice %12 {offsets = [0, 256], sizes = [128, 128], strides = [1, 1]} : vector<128x384xf32> to vector<128x128xf32>
    %c0_13 = arith.constant 0 : index
    %c0_14 = arith.constant 0 : index
    %16 = vector.load %arg14[%c0_13, %c0_14] : memref<128x128xbf16, #tpu.memory_space<vmem>>, vector<128x128xbf16>
    %17 = arith.truncf %13 : vector<128x128xf32> to vector<128x128xbf16>
    %cst_15 = arith.constant dense<0.000000e+00> : vector<128x128xf32>
    %18 = tpu.matmul %16, %17, %cst_15 {dimension_numbers = #tpu.dot_dimension_numbers<[1], [0], [0], [1], [0, 0, 1, 1], [], []>} : vector<128x128xbf16>, vector<128x128xbf16>, vector<128x128xf32> -> vector<128x128xf32>
    %19 = arith.addf %14, %18 : vector<128x128xf32>
    %c0_16 = arith.constant 0 : index
    %c0_17 = arith.constant 0 : index
    %20 = vector.load %arg15[%c0_16, %c0_17] : memref<128x128xbf16, #tpu.memory_space<vmem>>, vector<128x128xbf16>
    %21 = arith.truncf %15 : vector<128x128xf32> to vector<128x128xbf16>
    %cst_18 = arith.constant dense<0.000000e+00> : vector<128x128xf32>
    %22 = tpu.matmul %20, %21, %cst_18 {dimension_numbers = #tpu.dot_dimension_numbers<[1], [0], [0], [1], [0, 0, 1, 1], [], []>} : vector<128x128xbf16>, vector<128x128xbf16>, vector<128x128xf32> -> vector<128x128xf32>
    %23 = arith.addf %19, %22 : vector<128x128xf32>
    %c0_19 = arith.constant 0 : index
    %c0_20 = arith.constant 0 : index
    %24 = vector.load %arg7[%c0_19, %c0_20] : memref<1x128xf32, #tpu.memory_space<vmem>>, vector<1x128xf32>
    %25 = vector.broadcast %24 : vector<1x128xf32> to vector<128x128xf32>
    %26 = arith.addf %23, %25 : vector<128x128xf32>
    %cst_21 = arith.constant 0.000000e+00 : f32
    %27 = vector.broadcast %cst_21 : f32 to vector<128x128xf32>
    %28 = arith.maximumf %26, %27 : vector<128x128xf32>
    %c0_22 = arith.constant 0 : index
    %c0_23 = arith.constant 0 : index
    %29 = vector.load %arg8[%c0_22, %c0_23] : memref<1x128xf32, #tpu.memory_space<vmem>>, vector<1x128xf32>
    %30 = vector.broadcast %29 : vector<1x128xf32> to vector<128x128xf32>
    %31 = arith.mulf %28, %30 : vector<128x128xf32>
    %c0_24 = arith.constant 0 : index
    %c0_25 = arith.constant 0 : index
    %32 = vector.load %arg9[%c0_24, %c0_25] : memref<1x128xf32, #tpu.memory_space<vmem>>, vector<1x128xf32>
    %33 = vector.broadcast %32 : vector<1x128xf32> to vector<128x128xf32>
    %34 = arith.addf %31, %33 : vector<128x128xf32>
    %35 = arith.truncf %34 : vector<128x128xf32> to vector<128x128xbf16>
    %c0_26 = arith.constant 0 : index
    %c0_27 = arith.constant 0 : index
    %36 = vector.load %arg10[%c0_26, %c0_27] : memref<128x384xbf16, #tpu.memory_space<vmem>>, vector<128x384xbf16>
    %cst_28 = arith.constant dense<0.000000e+00> : vector<128x384xf32>
    %37 = tpu.matmul %35, %36, %cst_28 {dimension_numbers = #tpu.dot_dimension_numbers<[1], [0], [0], [1], [0, 0, 1, 1], [], []>} : vector<128x128xbf16>, vector<128x384xbf16>, vector<128x384xf32> -> vector<128x384xf32>
    %38 = vector.extract_strided_slice %37 {offsets = [0, 0], sizes = [128, 128], strides = [1, 1]} : vector<128x384xf32> to vector<128x128xf32>
    %39 = vector.extract_strided_slice %37 {offsets = [0, 128], sizes = [128, 128], strides = [1, 1]} : vector<128x384xf32> to vector<128x128xf32>
    %40 = vector.extract_strided_slice %37 {offsets = [0, 256], sizes = [128, 128], strides = [1, 1]} : vector<128x384xf32> to vector<128x128xf32>
    %c0_29 = arith.constant 0 : index
    %c0_30 = arith.constant 0 : index
    %41 = vector.load %arg14[%c0_29, %c0_30] : memref<128x128xbf16, #tpu.memory_space<vmem>>, vector<128x128xbf16>
    %42 = arith.truncf %38 : vector<128x128xf32> to vector<128x128xbf16>
    %cst_31 = arith.constant dense<0.000000e+00> : vector<128x128xf32>
    %43 = tpu.matmul %41, %42, %cst_31 {dimension_numbers = #tpu.dot_dimension_numbers<[1], [0], [0], [1], [0, 0, 1, 1], [], []>} : vector<128x128xbf16>, vector<128x128xbf16>, vector<128x128xf32> -> vector<128x128xf32>
    %44 = arith.addf %39, %43 : vector<128x128xf32>
    %c0_32 = arith.constant 0 : index
    %c0_33 = arith.constant 0 : index
    %45 = vector.load %arg15[%c0_32, %c0_33] : memref<128x128xbf16, #tpu.memory_space<vmem>>, vector<128x128xbf16>
    %46 = arith.truncf %40 : vector<128x128xf32> to vector<128x128xbf16>
    %cst_34 = arith.constant dense<0.000000e+00> : vector<128x128xf32>
    %47 = tpu.matmul %45, %46, %cst_34 {dimension_numbers = #tpu.dot_dimension_numbers<[1], [0], [0], [1], [0, 0, 1, 1], [], []>} : vector<128x128xbf16>, vector<128x128xbf16>, vector<128x128xf32> -> vector<128x128xf32>
    %48 = arith.addf %44, %47 : vector<128x128xf32>
    %c0_35 = arith.constant 0 : index
    %c0_36 = arith.constant 0 : index
    %49 = vector.load %arg11[%c0_35, %c0_36] : memref<1x128xf32, #tpu.memory_space<vmem>>, vector<1x128xf32>
    %50 = vector.broadcast %49 : vector<1x128xf32> to vector<128x128xf32>
    %51 = arith.addf %48, %50 : vector<128x128xf32>
    %cst_37 = arith.constant 0.000000e+00 : f32
    %52 = vector.broadcast %cst_37 : f32 to vector<128x128xf32>
    %53 = arith.maximumf %51, %52 : vector<128x128xf32>
    %c0_38 = arith.constant 0 : index
    %c0_39 = arith.constant 0 : index
    %54 = vector.load %arg12[%c0_38, %c0_39] : memref<1x128xf32, #tpu.memory_space<vmem>>, vector<1x128xf32>
    %55 = vector.broadcast %54 : vector<1x128xf32> to vector<128x128xf32>
    %56 = arith.mulf %53, %55 : vector<128x128xf32>
    %c0_40 = arith.constant 0 : index
    %c0_41 = arith.constant 0 : index
    %57 = vector.load %arg13[%c0_40, %c0_41] : memref<1x128xf32, #tpu.memory_space<vmem>>, vector<1x128xf32>
    %58 = vector.broadcast %57 : vector<1x128xf32> to vector<128x128xf32>
    %59 = arith.addf %56, %58 : vector<128x128xf32>
    %c0_42 = arith.constant 0 : index
    %c0_43 = arith.constant 0 : index
    %60 = vector.load %arg16[%c0_42, %c0_43] : memref<128x128xf32, #tpu.memory_space<vmem>>, vector<128x128xf32>
    tpu.vector_store %arg16[%c0_42, %c0_43], %59 {strides = array<i32>} : memref<128x128xf32, #tpu.memory_space<vmem>>, vector<128x128xf32>,
    return
  }
  func.func @transform_0(%arg0: i32) -> (i32, i32) {
    %c0_i32 = arith.constant 0 : i32
    %c0_i32_0 = arith.constant 0 : i32
    return %arg0, %c0_i32 : i32, i32
  }
  func.func @transform_1(%arg0: i32) -> (i32, i32) {
    %c0_i32 = arith.constant 0 : i32
    %c0_i32_0 = arith.constant 0 : i32
    return %arg0, %c0_i32 : i32, i32
  }
  func.func @transform_2(%arg0: i32) -> (i32, i32) {
    %c0_i32 = arith.constant 0 : i32
    %c0_i32_0 = arith.constant 0 : i32
    %c0_i32_1 = arith.constant 0 : i32
    return %c0_i32, %c0_i32_0 : i32, i32
  }
  func.func @transform_3(%arg0: i32) -> (i32, i32) {
    %c0_i32 = arith.constant 0 : i32
    %c0_i32_0 = arith.constant 0 : i32
    %c0_i32_1 = arith.constant 0 : i32
    return %c0_i32, %c0_i32_0 : i32, i32
  }
  func.func @transform_4(%arg0: i32) -> (i32, i32) {
    %c0_i32 = arith.constant 0 : i32
    %c0_i32_0 = arith.constant 0 : i32
    %c0_i32_1 = arith.constant 0 : i32
    return %c0_i32, %c0_i32_0 : i32, i32
  }
  func.func @transform_5(%arg0: i32) -> (i32, i32) {
    %c0_i32 = arith.constant 0 : i32
    %c0_i32_0 = arith.constant 0 : i32
    %c0_i32_1 = arith.constant 0 : i32
    return %c0_i32, %c0_i32_0 : i32, i32
  }
  func.func @transform_6(%arg0: i32) -> (i32, i32) {
    %c0_i32 = arith.constant 0 : i32
    %c0_i32_0 = arith.constant 0 : i32
    %c0_i32_1 = arith.constant 0 : i32
    return %c0_i32, %c0_i32_0 : i32, i32
  }
  func.func @transform_7(%arg0: i32) -> (i32, i32) {
    %c0_i32 = arith.constant 0 : i32
    %c0_i32_0 = arith.constant 0 : i32
    %c0_i32_1 = arith.constant 0 : i32
    return %c0_i32, %c0_i32_0 : i32, i32
  }
  func.func @transform_8(%arg0: i32) -> (i32, i32) {
    %c0_i32 = arith.constant 0 : i32
    %c0_i32_0 = arith.constant 0 : i32
    %c0_i32_1 = arith.constant 0 : i32
    return %c0_i32, %c0_i32_0 : i32, i32
  }
  func.func @transform_9(%arg0: i32) -> (i32, i32) {
    %c0_i32 = arith.constant 0 : i32
    %c0_i32_0 = arith.constant 0 : i32
    %c0_i32_1 = arith.constant 0 : i32
    return %c0_i32, %c0_i32_0 : i32, i32
  }
  func.func @transform_10(%arg0: i32) -> (i32, i32) {
    %c0_i32 = arith.constant 0 : i32
    %c0_i32_0 = arith.constant 0 : i32
    %c0_i32_1 = arith.constant 0 : i32
    return %c0_i32, %c0_i32_0 : i32, i32
  }
  func.func @transform_11(%arg0: i32) -> (i32, i32) {
    %c0_i32 = arith.constant 0 : i32
    %c0_i32_0 = arith.constant 0 : i32
    %c0_i32_1 = arith.constant 0 : i32
    return %c0_i32, %c0_i32_0 : i32, i32
  }
  func.func @transform_12(%arg0: i32) -> (i32, i32) {
    %c0_i32 = arith.constant 0 : i32
    %c0_i32_0 = arith.constant 0 : i32
    %c0_i32_1 = arith.constant 0 : i32
    return %c0_i32, %c0_i32_0 : i32, i32
  }
  func.func @transform_13(%arg0: i32) -> (i32, i32) {
    %c0_i32 = arith.constant 0 : i32
    %c0_i32_0 = arith.constant 0 : i32
    %c0_i32_1 = arith.constant 0 : i32
    return %c0_i32, %c0_i32_0 : i32, i32
  }
  func.func @transform_14(%arg0: i32) -> (i32, i32) {
    %c0_i32 = arith.constant 0 : i32
    %c0_i32_0 = arith.constant 0 : i32
    %c0_i32_1 = arith.constant 0 : i32
    return %c0_i32, %c0_i32_0 : i32, i32
  }
  func.func @transform_15(%arg0: i32) -> (i32, i32) {
    %c0_i32 = arith.constant 0 : i32
    %c0_i32_0 = arith.constant 0 : i32
    return %arg0, %c0_i32 : i32, i32
  }
}

</mosaic_0001>

<bundles_post_ra>
// kernel: tile.38
= control target key start
LH: loop header
LB: loop body
LE: loop exit
PB: predicated region body
PF: predicated region fallthrough
CT: control target
= control target key end

     0   :  { %s40_s0 = inlined_call_operand.vmem [shape: f32[4], index: 0, kind: input, shape index: {}]   ;;  %s41_s1 = inlined_call_operand.vmem [shape: f32[32,4], index: 1, kind: output, shape index: {}]  }
   0x1   :  { %v4_v0 = vld [vmem:[%s40_s0] ss:$0 sm:$0xff] }
   0x2   :  { %5 = vst [vmem:[%s41_s1] sm:$0xff] %v4_v0 }
   0x3   :  { %12 = vst [vmem:[%s41_s1 + $0x8] sm:$0xff] %v4_v0 }
   0x4   :  { %13 = vst [vmem:[%s41_s1 + $0x10] sm:$0xff] %v4_v0 }
   0x5   :  { %14 = vst [vmem:[%s41_s1 + $0x18] sm:$0xff] %v4_v0 }

// kernel: tile.39
= control target key start
LH: loop header
LB: loop body
LE: loop exit
PB: predicated region body
PF: predicated region fallthrough
CT: control target
= control target key end

     0   :  { %s259_s10 = smov 124   ;;  %s260_s11 = smov 116   ;;  %vm3_vm0 = vcmask 31744   ;;  %vm9_vm1 = vcmask 1048544   ;;  %vm15_vm2 = vcmask 1015744   ;;  %vm21_vm3 = vcmask 982944   ;;  %s399_s0 = inlined_call_operand.vmem [shape: f32[32,4], index: 0, kind: input, shape index: {}]   ;;  %s400_s1 = inlined_call_operand.vmem [shape: f32[1,128], index: 1, kind: output, shape index: {}]  }
   0x1   :  { %v197_v0 = vld [vmem:[%s399_s0 + $0x1f] sm:$0x1]   ;;  %v199_v1 = vld [vmem:[%s399_s0 + $0x1d] sm:$0x1]   ;;  %v201_v2 = vld [vmem:[%s399_s0 + $0x1b] sm:$0x1]  }
   0x2   :  { %7 = vrot.lane.b32.xlu0 %v197_v0, %s259_s10  ;;  %19 = vrot.lane.b32.xlu1 %v199_v1, %s260_s11  ;;  %s261_s14 = smov 108   ;;  %v198_v3 = vld [vmem:[%s399_s0 + $0x1e] sm:$0x1]   ;;  %v200_v4 = vld [vmem:[%s399_s0 + $0x1c] sm:$0x1]   ;;  %s262_s19 = smov 120  }
   0x3   :  { %31 = vrot.lane.b32.xlu2 %v201_v2, %s261_s14  ;;  %s263_s20 = smov 112   ;;  %v202_v5 = vld [vmem:[%s399_s0 + $0x1a] sm:$0x1]   ;;  %s264_s23 = smov 104   ;;  %v203_v6 = vld [vmem:[%s399_s0 + $0x19] sm:$0x1]  }
   0x4   :  { %v204_v7 = vld [vmem:[%s399_s0 + $0x18] sm:$0x1]   ;;  %s265_s28 = smov 100   ;;  %s266_s29 = smov 96   ;;  %v205_v8 = vld [vmem:[%s399_s0 + $0x17] sm:$0x1]  }
   0x5   :  { %s267_s3 = smov 92   ;;  %v206_v9 = vld [vmem:[%s399_s0 + $0x16] sm:$0x1]   ;;  %v207_v10 = vld [vmem:[%s399_s0 + $0x15] sm:$0x1]   ;;  %s268_s8 = smov 88  }
   0x6   :  { %s269_s9 = smov 84   ;;  %v208_v11 = vld [vmem:[%s399_s0 + $0x14] sm:$0x1]   ;;  %s270_s12 = smov 80   ;;  %v209_v12 = vld [vmem:[%s399_s0 + $0x13] sm:$0x1]  }
   0x7   :  { %v210_v13 = vld [vmem:[%s399_s0 + $0x12] sm:$0x1]   ;;  %s271_s17 = smov 76   ;;  %s272_s18 = smov 72   ;;  %v211_v14 = vld [vmem:[%s399_s0 + $0x11] sm:$0x1]  }
   0x8   :  { %s273_s21 = smov 68   ;;  %v212_v15 = vld [vmem:[%s399_s0 + $0x10] sm:$0x1]   ;;  %v213_v16 = vld [vmem:[%s399_s0 + $0xf] sm:$0x1]   ;;  %s274_s26 = smov 64  }
   0x9   :  { %s275_s27 = smov 60   ;;  %v214_v17 = vld [vmem:[%s399_s0 + $0xe] sm:$0x1]   ;;  %s276_s30 = smov 56   ;;  %v215_v18 = vld [vmem:[%s399_s0 + $0xd] sm:$0x1]  }
   0xa   :  { %13 = vrot.lane.b32.xlu0 %v198_v3, %s262_s19  ;;  %25 = vrot.lane.b32.xlu1 %v200_v4, %s263_s20  ;;  %v216_v19 = vld [vmem:[%s399_s0 + $0xc] sm:$0x1]   ;;  %s277_s6 = smov 52   ;;  %s278_s7 = smov 48   ;;  %v217_v20 = vld [vmem:[%s399_s0 + $0xb] sm:$0x1]  }
   0xb   :  { %37 = vrot.lane.b32.xlu2 %v202_v5, %s264_s23  ;;  %s279_s10 = smov 44   ;;  %v218_v21 = vld [vmem:[%s399_s0 + $0xa] sm:$0x1]   ;;  %v219_v22 = vld [vmem:[%s399_s0 + $0x9] sm:$0x1]   ;;  %s280_s15 = smov 40  }
   0xc   :  { %s281_s16 = smov 36   ;;  %v220_v23 = vld [vmem:[%s399_s0 + $0x8] sm:$0x1]   ;;  %s282_s19 = smov 32   ;;  %v221_v24 = vld [vmem:[%s399_s0 + $0x7] sm:$0x1]  }
   0xd   :  { %v222_v25 = vld [vmem:[%s399_s0 + $0x6] sm:$0x1]   ;;  %s283_s24 = smov 28   ;;  %s284_s25 = smov 24   ;;  %v223_v26 = vld [vmem:[%s399_s0 + $0x5] sm:$0x1]  }
   0xe   :  { %v224_v27 = vld [vmem:[%s399_s0 + $0x4] sm:$0x1]   ;;  %v225_v28 = vld [vmem:[%s399_s0 + $0x3] sm:$0x1]   ;;  %s286_s4 = smov 16   ;;  %s287_s5 = smov 12  }
   0xf   :  { %v226_v29 = vld [vmem:[%s399_s0 + $0x2] sm:$0x1]   ;;  %v227_v30 = vld [vmem:[%s399_s0 + $0x1] sm:$0x1]   ;;  %s289_s11 = smov 4   ;;  %vm27_vm4 = vcmask 950144  }
  0x10   :  { %v2_v31 = vld [vmem:[%s399_s0] sm:$0x1]   ;;  %vm33_vm5 = vcmask 917344   ;;  %vm39_vm6 = vcmask 884544   ;;  %vm45_vm7 = vcmask 851744   ;;  %vm51_vm8 = vcmask 818944  }
  0x11   :  { %4 = vst.msk [vmem:[#allocation0] sm:$0x1] %vm3_vm0, %v2_v31   ;;  %vm57_vm9 = vcmask 786144   ;;  %vm63_vm10 = vcmask 753344   ;;  %vm69_vm11 = vcmask 720544   ;;  %vm75_vm12 = vcmask 687744  }
  0x12   :  { %43 = vrot.lane.b32.xlu0 %v203_v6, %s265_s28  ;;  %49 = vrot.lane.b32.xlu1 %v204_v7, %s266_s29  ;;  %s285_s28 = smov 20   ;;  %vm81_vm13 = vcmask 654944   ;;  %vm87_vm14 = vcmask 622144   ;;  %vm93_vm15 = vcmask 589344   ;;  %vm99_vm0 = vcmask 556544  }
  0x13   :  { %55 = vrot.lane.b32.xlu2 %v205_v8, %s267_s3 }
  0x1a   :  { %61 = vrot.lane.b32.xlu0 %v206_v9, %s268_s8  ;;  %67 = vrot.lane.b32.xlu1 %v207_v10, %s269_s9  ;;  %s288_s8 = smov 8  }
  0x1b   :  { %73 = vrot.lane.b32.xlu2 %v208_v11, %s270_s12 }
  0x22   :  { %79 = vrot.lane.b32.xlu0 %v209_v12, %s271_s17  ;;  %85 = vrot.lane.b32.xlu1 %v210_v13, %s272_s18 }
  0x23   :  { %91 = vrot.lane.b32.xlu2 %v211_v14, %s273_s21 }
  0x2a   :  { %97 = vrot.lane.b32.xlu0 %v212_v15, %s274_s26  ;;  %103 = vrot.lane.b32.xlu1 %v213_v16, %s275_s27 }
  0x2b   :  { %109 = vrot.lane.b32.xlu2 %v214_v17, %s276_s30 }
  0x32   :  { %115 = vrot.lane.b32.xlu0 %v215_v18, %s277_s6  ;;  %121 = vrot.lane.b32.xlu1 %v216_v19, %s278_s7 }
  0x33   :  { %127 = vrot.lane.b32.xlu2 %v217_v20, %s279_s10 }
  0x3a   :  { %133 = vrot.lane.b32.xlu0 %v218_v21, %s280_s15  ;;  %139 = vrot.lane.b32.xlu1 %v219_v22, %s281_s16 }
  0x3b   :  { %145 = vrot.lane.b32.xlu2 %v220_v23, %s282_s19 }
  0x42   :  { %151 = vrot.lane.b32.xlu0 %v221_v24, %s283_s24  ;;  %157 = vrot.lane.b32.xlu1 %v222_v25, %s284_s25 }
  0x43   :  { %163 = vrot.lane.b32.xlu2 %v223_v26, %s285_s28 }
  0x4a   :  { %169 = vrot.lane.b32.xlu0 %v224_v27, %s286_s4  ;;  %175 = vrot.lane.b32.xlu1 %v225_v28, %s287_s5 }
  0x4b   :  { %181 = vrot.lane.b32.xlu2 %v226_v29, %s288_s8 }
  0x52   :  { %187 = vrot.lane.b32.xlu0 %v227_v30, %s289_s11 }
  0x5d   :  { %v32_v32 = vpop.permute.xlu2 %31  }
  0x65   :  { %v38_v33 = vpop.permute.xlu2 %37  }
  0x6d   :  { %v56_v34 = vpop.permute.xlu2 %55  }
  0x74   :  { %v8_v35 = vpop.permute.xlu0 %7   ;;  %v20_v36 = vpop.permute.xlu1 %19  }
  0x75   :  { %10 = vst.msk [vmem:[#allocation0] sm:$0x1] %vm9_vm1, %v8_v35   ;;  %v74_v37 = vpop.permute.xlu2 %73   ;;  %vm105_vm1 = vcmask 523744  }
  0x7c   :  { %v14_v38 = vpop.permute.xlu0 %13   ;;  %v26_v39 = vpop.permute.xlu1 %25  }
  0x7d   :  { %16 = vst.msk [vmem:[#allocation0] sm:$0x1] %vm15_vm2, %v14_v38   ;;  %v92_v40 = vpop.permute.xlu2 %91   ;;  %vm111_vm2 = vcmask 490944  }
  0x7e   :  { %22 = vst.msk [vmem:[#allocation0] sm:$0x1] %vm21_vm3, %v20_v36   ;;  %vm117_vm3 = vcmask 458144  }
  0x7f   :  { %28 = vst.msk [vmem:[#allocation0] sm:$0x1] %vm27_vm4, %v26_v39   ;;  %vm123_vm4 = vcmask 425344  }
  0x80   :  { %34 = vst.msk [vmem:[#allocation0] sm:$0x1] %vm33_vm5, %v32_v32   ;;  %vm129_vm5 = vcmask 392544  }
  0x81   :  { %40 = vst.msk [vmem:[#allocation0] sm:$0x1] %vm39_vm6, %v38_v33   ;;  %vm135_vm6 = vcmask 359744  }
  0x84   :  { %v44_v41 = vpop.permute.xlu0 %43   ;;  %v50_v42 = vpop.permute.xlu1 %49  }
  0x85   :  { %46 = vst.msk [vmem:[#allocation0] sm:$0x1] %vm45_vm7, %v44_v41   ;;  %v110_v43 = vpop.permute.xlu2 %109   ;;  %vm141_vm7 = vcmask 326944  }
  0x86   :  { %52 = vst.msk [vmem:[#allocation0] sm:$0x1] %vm51_vm8, %v50_v42   ;;  %vm147_vm8 = vcmask 294144  }
  0x87   :  { %58 = vst.msk [vmem:[#allocation0] sm:$0x1] %vm57_vm9, %v56_v34   ;;  %vm153_vm9 = vcmask 261344  }
  0x8c   :  { %v62_v44 = vpop.permute.xlu0 %61   ;;  %v68_v45 = vpop.permute.xlu1 %67  }
  0x8d   :  { %64 = vst.msk [vmem:[#allocation0] sm:$0x1] %vm63_vm10, %v62_v44   ;;  %v128_v46 = vpop.permute.xlu2 %127   ;;  %vm159_vm10 = vcmask 228544  }
  0x8e   :  { %70 = vst.msk [vmem:[#allocation0] sm:$0x1] %vm69_vm11, %v68_v45   ;;  %vm165_vm11 = vcmask 195744  }
  0x8f   :  { %76 = vst.msk [vmem:[#allocation0] sm:$0x1] %vm75_vm12, %v74_v37   ;;  %vm171_vm12 = vcmask 162944  }
  0x94   :  { %v80_v47 = vpop.permute.xlu0 %79   ;;  %v86_v48 = vpop.permute.xlu1 %85  }
  0x95   :  { %82 = vst.msk [vmem:[#allocation0] sm:$0x1] %vm81_vm13, %v80_v47   ;;  %v146_v49 = vpop.permute.xlu2 %145   ;;  %vm177_vm13 = vcmask 130144  }
  0x96   :  { %88 = vst.msk [vmem:[#allocation0] sm:$0x1] %vm87_vm14, %v86_v48   ;;  %vm183_vm14 = vcmask 97344  }
  0x97   :  { %94 = vst.msk [vmem:[#allocation0] sm:$0x1] %vm93_vm15, %v92_v40   ;;  %vm189_vm15 = vcmask 64544  }
  0x9c   :  { %v98_v50 = vpop.permute.xlu0 %97   ;;  %v104_v51 = vpop.permute.xlu1 %103  }
  0x9d   :  { %100 = vst.msk [vmem:[#allocation0] sm:$0x1] %vm99_vm0, %v98_v50   ;;  %v164_v52 = vpop.permute.xlu2 %163  }
  0x9e   :  { %106 = vst.msk [vmem:[#allocation0] sm:$0x1] %vm105_vm1, %v104_v51  }
  0x9f   :  { %112 = vst.msk [vmem:[#allocation0] sm:$0x1] %vm111_vm2, %v110_v43  }
  0xa4   :  { %v116_v53 = vpop.permute.xlu0 %115   ;;  %v122_v54 = vpop.permute.xlu1 %121  }
  0xa5   :  { %118 = vst.msk [vmem:[#allocation0] sm:$0x1] %vm117_vm3, %v116_v53   ;;  %v182_v55 = vpop.permute.xlu2 %181  }
  0xa6   :  { %124 = vst.msk [vmem:[#allocation0] sm:$0x1] %vm123_vm4, %v122_v54  }
  0xa7   :  { %130 = vst.msk [vmem:[#allocation0] sm:$0x1] %vm129_vm5, %v128_v46  }
  0xac   :  { %v134_v56 = vpop.permute.xlu0 %133   ;;  %v140_v57 = vpop.permute.xlu1 %139  }
  0xad   :  { %136 = vst.msk [vmem:[#allocation0] sm:$0x1] %vm135_vm6, %v134_v56  }
  0xae   :  { %142 = vst.msk [vmem:[#allocation0] sm:$0x1] %vm141_vm7, %v140_v57  }
  0xaf   :  { %148 = vst.msk [vmem:[#allocation0] sm:$0x1] %vm147_vm8, %v146_v49  }
  0xb4   :  { %v152_v58 = vpop.permute.xlu0 %151   ;;  %v158_v59 = vpop.permute.xlu1 %157  }
  0xb5   :  { %154 = vst.msk [vmem:[#allocation0] sm:$0x1] %vm153_vm9, %v152_v58  }
  0xb6   :  { %160 = vst.msk [vmem:[#allocation0] sm:$0x1] %vm159_vm10, %v158_v59  }
  0xb7   :  { %166 = vst.msk [vmem:[#allocation0] sm:$0x1] %vm165_vm11, %v164_v52  }
  0xbc   :  { %v170_v60 = vpop.permute.xlu0 %169   ;;  %v176_v61 = vpop.permute.xlu1 %175  }
  0xbd   :  { %172 = vst.msk [vmem:[#allocation0] sm:$0x1] %vm171_vm12, %v170_v60  }
  0xbe   :  { %178 = vst.msk [vmem:[#allocation0] sm:$0x1] %vm177_vm13, %v176_v61  }
  0xbf   :  { %184 = vst.msk [vmem:[#allocation0] sm:$0x1] %vm183_vm14, %v182_v55  }
  0xc4   :  { %v188_v62 = vpop.permute.xlu0 %187  }
  0xc5   :  { %190 = vst.msk [vmem:[#allocation0] sm:$0x1] %vm189_vm15, %v188_v62  }
  0xcc   :  { %v193_v63 = vld [vmem:[#allocation0] sm:$0x1] }
  0xcd   :  { %196 = vst [vmem:[%s400_s1] sm:$0x1] %v193_v63 }

// kernel: upconv_block_forward.1
= control target key start
LH: loop header
LB: loop body
LE: loop exit
PB: predicated region body
PF: predicated region fallthrough
CT: control target
= control target key end

     0   :  { %s3092_s18 = smov 0   ;;  %s4160_s0 = inlined_call_operand.vmem [shape: f32[128,128], index: 0, kind: input, shape index: {}]   ;;  %s4161_s1 = inlined_call_operand.vmem [shape: bf16[256,128], index: 1, kind: input, shape index: {}]   ;;  %s4162_s2 = inlined_call_operand.vmem [shape: f32[128,64], index: 2, kind: input, shape index: {}]   ;;  %s4163_s3 = inlined_call_operand.vmem [shape: f32[128,128], index: 3, kind: input, shape index: {}]   ;;  %s4164_s4 = inlined_call_operand.vmem [shape: f32[1,128], index: 4, kind: input, shape index: {}]   ;;  %s4165_s5 = inlined_call_operand.vmem [shape: bf16[256,384], index: 5, kind: input, shape index: {}]   ;;  %s4166_s6 = inlined_call_operand.vmem [shape: f32[1,128], index: 6, kind: input, shape index: {}]   ;;  %s4167_s7 = inlined_call_operand.vmem [shape: f32[1,128], index: 7, kind: input, shape index: {}]   ;;  %s4168_s8 = inlined_call_operand.vmem [shape: f32[1,128], index: 8, kind: input, shape index: {}]   ;;  %s4169_s9 = inlined_call_operand.vmem [shape: bf16[128,384], index: 9, kind: input, shape index: {}]   ;;  %s4170_s10 = inlined_call_operand.vmem [shape: f32[1,128], index: 10, kind: input, shape index: {}]   ;;  %s4171_s11 = inlined_call_operand.vmem [shape: f32[1,128], index: 11, kind: input, shape index: {}]   ;;  %s4172_s12 = inlined_call_operand.vmem [shape: f32[1,128], index: 12, kind: input, shape index: {}]   ;;  %s4173_s13 = inlined_call_operand.vmem [shape: bf16[128,128], index: 13, kind: input, shape index: {}]   ;;  %s4174_s14 = inlined_call_operand.vmem [shape: bf16[128,128], index: 14, kind: input, shape index: {}]   ;;  %s4175_s15 = inlined_call_operand.vmem [shape: f32[256,128], index: 15, kind: output, shape index: {}]  }
   0x1 LB: > { %s2456_s19 = sadd.s32 4294967295, %s3010_s18   ;;  %p2460_p0 = scmp.ge.s32.totalorder %s3010_s18, 1  ;;  %s3010_s18 = sphi %s3092_s18, %s25_s18  }
   0x2   : > { %p449_p1 = scmp.lt.s32.totalorder %s3010_s18, 3 }
   0x4   : > { %p450_p2 = pnand %p2460_p0, %p449_p1 }
   0x6   : > { %453 = sbr.rel (%p450_p2) target bundleno = 1412 (0x584), region = 80 }
   0xb   : > { %s2461_s20 = sshll.u32 %s2456_s19, 3  ;;  %v544_v8 = vld [vmem:[%s4162_s2] sm:$0xff]  ;;  %vm560_vm0 = vcmask 523264   ;;  %v545_v9 = vld [vmem:[%s4162_s2 + $0x8] sm:$0xff]  ;;  %v546_v10 = vld [vmem:[%s4162_s2 + $0x10] sm:$0xff]  ;;  %s2463_s29 = sshll.u32 %s2456_s19, 4 }
   0xc   : > { %p503_p3 = scmp.lt.s32.totalorder %s2461_s20, 15  ;;  %v547_v11 = vld [vmem:[%s4162_s2 + $0x18] sm:$0xff]  ;;  %v548_v12 = vld [vmem:[%s4162_s2 + $0x20] sm:$0xff]  ;;  %v549_v13 = vld [vmem:[%s4162_s2 + $0x28] sm:$0xff]  ;;  %p509_p4 = scmp.lt.s32.totalorder %s2463_s29, 31 }
   0xd   : > { %v550_v14 = vld [vmem:[%s4162_s2 + $0x30] sm:$0xff]  ;;  %v551_v15 = vld [vmem:[%s4162_s2 + $0x38] sm:$0xff]  ;;  %v552_v17 = vld [vmem:[%s4162_s2 + $0x40] sm:$0xff] }
   0xe   : > { %s4189_s20 = smov (!%p503_p3, %s2461_s20), 15  ;;  %v689_v16 = vld [vmem:[%s4163_s3 + $0x78] sm:$0xff]  ;;  %v688_v18 = vld [vmem:[%s4163_s3 + $0x70] sm:$0xff]  ;;  %v687_v19 = vld [vmem:[%s4163_s3 + $0x68] sm:$0xff]  ;;  %s4191_s29 = smov (!%p509_p4, %s2463_s29), 31 }
   0xf   : > { %s2462_s21 = sshll.u32 %s4189_s20, 3  ;;  %694 = vmatpush.msra.mxu1 %v689_v16  ;;  %2965 = vmatpush.msra.mxu3 %v689_v16  ;;  %v686_v20 = vld [vmem:[%s4163_s3 + $0x60] sm:$0xff]  ;;  %v685_v21 = vld [vmem:[%s4163_s3 + $0x58] sm:$0xff]  ;;  %v553_v22 = vld [vmem:[%s4162_s2 + $0x48] sm:$0xff]  ;;  %s2464_s28 = sshll.u32 %s4191_s29, 2 }
  0x10   : > { %s506_s24 = scalar_lea.vmem %s4160_s0, %s2462_s21  ;;  %v684_v23 = vld [vmem:[%s4163_s3 + $0x50] sm:$0xff]  ;;  %v683_v24 = vld [vmem:[%s4163_s3 + $0x48] sm:$0xff]  ;;  %v682_v25 = vld [vmem:[%s4163_s3 + $0x40] sm:$0xff]  ;;  %s3393_s19 = scalar_lea.vmem %s4161_s1, %s2464_s28 }
  0x11   : > { %v527_v0 = vld [vmem:[%s506_s24 + $0x38] sm:$0xff]  ;;  %v526_v1 = vld [vmem:[%s506_s24 + $0x30] sm:$0xff]  ;;  %v525_v2 = vld [vmem:[%s506_s24 + $0x28] sm:$0xff]  ;;  %695 = vmatpush.msra.mxu1 %v688_v18  ;;  %2966 = vmatpush.msra.mxu3 %v688_v18  ;;  %s2466_s30 = sshll.u32 %s4191_s29, 3 }
  0x12   : > { %617 = vmatpush.msra.mxu0 %v527_v0  ;;  %v524_v3 = vld [vmem:[%s506_s24 + $0x20] sm:$0xff]  ;;  %v523_v4 = vld [vmem:[%s506_s24 + $0x18] sm:$0xff]  ;;  %v522_v5 = vld [vmem:[%s506_s24 + $0x10] sm:$0xff] }
  0x13   : > { %v521_v6 = vld [vmem:[%s506_s24 + $0x8] sm:$0xff]  ;;  %v520_v7 = vld [vmem:[%s506_s24] sm:$0xff]  ;;  %696 = vmatpush.msra.mxu1 %v687_v19  ;;  %2967 = vmatpush.msra.mxu3 %v687_v19  ;;  %v681_v26 = vld [vmem:[%s4163_s3 + $0x38] sm:$0xff] }
  0x14   : > { %618 = vmatpush.msra.mxu0 %v526_v1  ;;  %v554_v27 = vld [vmem:[%s4162_s2 + $0x50] sm:$0xff]  ;;  %v679_v29 = vld [vmem:[%s4163_s3 + $0x28] sm:$0xff]  ;;  %v678_v30 = vld [vmem:[%s4163_s3 + $0x20] sm:$0xff] }
  0x15   : > { %697 = vmatpush.msra.mxu1 %v686_v20  ;;  %2968 = vmatpush.msra.mxu3 %v686_v20  ;;  %v680_v28 = vld [vmem:[%s4163_s3 + $0x30] sm:$0xff]  ;;  %v677_v31 = vld [vmem:[%s4163_s3 + $0x18] sm:$0xff]  ;;  %v675_v34 = vld [vmem:[%s4163_s3 + $0x8] sm:$0xff] }
  0x16   : > { %619 = vmatpush.msra.mxu0 %v525_v2  ;;  %v555_v32 = vld [vmem:[%s4162_s2 + $0x58] sm:$0xff]  ;;  %v676_v33 = vld [vmem:[%s4163_s3 + $0x10] sm:$0xff]  ;;  %v674_v35 = vld [vmem:[%s4163_s3] sm:$0xff] }
  0x17   : > { %698 = vmatpush.msra.mxu1 %v685_v21  ;;  %2969 = vmatpush.msra.mxu3 %v685_v21  ;;  %v556_v36 = vld [vmem:[%s4162_s2 + $0x60] sm:$0xff]  ;;  %v557_v37 = vld [vmem:[%s4162_s2 + $0x68] sm:$0xff]  ;;  %v558_v38 = vld [vmem:[%s4162_s2 + $0x70] sm:$0xff] }
  0x18   : > { %620 = vmatpush.msra.mxu0 %v524_v3  ;;  %v559_v39 = vld [vmem:[%s4162_s2 + $0x78] sm:$0xff]  ;;  %v2697_v49 = vld [vmem:[%s4165_s5 + $0x168] sm:$0xf]  ;;  %v2923_v50 = vld [vmem:[%s4165_s5 + $0x170] sm:$0xf0] }
  0x19   : > { %699 = vmatpush.msra.mxu1 %v684_v23  ;;  %2970 = vmatpush.msra.mxu3 %v684_v23  ;;  %v2698_v52 = vor.u32 %v2923_v50, %v2697_v49  ;;  %v2685_v53 = vld [vmem:[%s4165_s5 + $0x150] sm:$0xf]  ;;  %v2920_v54 = vld [vmem:[%s4165_s5 + $0x158] sm:$0xf0]  ;;  %v2601_v56 = vld [vmem:[%s4165_s5 + $0xa8] sm:$0xf] }
  0x1a   : > { %621 = vmatpush.msra.mxu0 %v523_v4  ;;  %v2686_v55 = vor.u32 %v2920_v54, %v2685_v53  ;;  %v2899_v57 = vld [vmem:[%s4165_s5 + $0xb0] sm:$0xf0]  ;;  %v2898_v58 = vld [vmem:[%s4165_s5 + $0xac] sm:$0xf]  ;;  %v2603_v60 = vld [vmem:[%s4165_s5 + $0xb4] sm:$0xf0] }
  0x1b   : > { %700 = vmatpush.msra.mxu1 %v683_v24  ;;  %2971 = vmatpush.msra.mxu3 %v683_v24  ;;  %v2602_v59 = vor.u32 %v2899_v57, %v2601_v56  ;;  %v2606_v61 = vor.u32 %v2898_v58, %v2603_v60  ;;  %v2673_v62 = vld [vmem:[%s4165_s5 + $0x138] sm:$0xf]  ;;  %v2917_v63 = vld [vmem:[%s4165_s5 + $0x140] sm:$0xf0]  ;;  %v2589_v2 = vld [vmem:[%s4165_s5 + $0x90] sm:$0xf] }
  0x1c   : > { %622 = vmatpush.msra.mxu0 %v522_v5  ;;  %v2674_v1 = vor.u32 %v2917_v63, %v2673_v62  ;;  %v2896_v3 = vld [vmem:[%s4165_s5 + $0x98] sm:$0xf0]  ;;  %v2895_v4 = vld [vmem:[%s4165_s5 + $0x94] sm:$0xf]  ;;  %v2565_v21 = vld [vmem:[%s4165_s5 + $0x60] sm:$0xf] }
  0x1d   : > { %701 = vmatpush.msra.mxu1 %v682_v25  ;;  %2972 = vmatpush.msra.mxu3 %v682_v25  ;;  %v2590_v5 = vor.u32 %v2896_v3, %v2589_v2  ;;  %v2911_v18 = vld [vmem:[%s4165_s5 + $0x110] sm:$0xf0]  ;;  %v2889_v23 = vld [vmem:[%s4165_s5 + $0x64] sm:$0xf]  ;;  %v2567_v25 = vld [vmem:[%s4165_s5 + $0x6c] sm:$0xf0] }
  0x1e   : > { %623 = vmatpush.msra.mxu0 %v521_v6  ;;  %2981 = vmatpush.bf16.msra.mxu2 %v2602_v59  ;;  %v2591_v6 = vld [vmem:[%s4165_s5 + $0x9c] sm:$0xf0]  ;;  %v2529_v49 = vld [vmem:[%s4165_s5 + $0x18] sm:$0xf]  ;;  %v2881_v50 = vld [vmem:[%s4165_s5 + $0x20] sm:$0xf0] }
  0x1f   : > { %702 = vmatpush.msra.mxu1 %v681_v26  ;;  %2973 = vmatpush.msra.mxu3 %v681_v26  ;;  %v2570_v26 = vor.u32 %v2889_v23, %v2567_v25  ;;  %v2531_v53 = vld [vmem:[%s4165_s5 + $0x24] sm:$0xf0]  ;;  %v2517_v56 = vld [vmem:[%s4165_s5] sm:$0xf]  ;;  %v2878_v57 = vld [vmem:[%s4165_s5 + $0x8] sm:$0xf0] }
  0x20   : > { %624 = vmatpush.msra.mxu0 %v520_v7  ;;  %v2661_v7 = vld [vmem:[%s4165_s5 + $0x120] sm:$0xf]  ;;  %v2877_v58 = vld [vmem:[%s4165_s5 + $0x4] sm:$0xf]  ;;  %v2519_v60 = vld [vmem:[%s4165_s5 + $0xc] sm:$0xf0] }
  0x21   : > { %2467 = vmatmul.msk.f32.vlgmr.msra.gmra.mxu0 %vm560_vm0, %v544_v8  ;;  %703 = vmatpush.msra.mxu1 %v680_v28  ;;  %v2914_v8 = vld [vmem:[%s4165_s5 + $0x128] sm:$0xf0]  ;;  %v2699_v63 = vld [vmem:[%s4165_s5 + $0x174] sm:$0xf0]  ;;  %v2919_v2 = vld [vmem:[%s4165_s5 + $0x154] sm:$0xf] }
  0x22   : > { %2974 = vmatpush.msra.mxu3 %v680_v28  ;;  %1289 = vmatpush.bf16.msrb.mxu0 %v2606_v61  ;;  %v2908_v28 = vld [vmem:[%s4165_s5 + $0xf8] sm:$0xf0]  ;;  %v2522_v61 = vor.u32 %v2877_v58, %v2519_v60  ;;  %v2922_v62 = vld [vmem:[%s4165_s5 + $0x16c] sm:$0xf]  ;;  %v2687_v3 = vld [vmem:[%s4165_s5 + $0x15c] sm:$0xf0] }
  0x23   : > { %704 = vmatpush.msra.mxu1 %v679_v29  ;;  %2982 = vmatpush.bf16.msra.mxu2 %v2590_v5  ;;  %v2627_v23 = vld [vmem:[%s4165_s5 + $0xe4] sm:$0xf0] }
  0x24   : > { %2975 = vmatpush.msra.mxu3 %v679_v29 }
  0x25   : > { %705 = vmatpush.msra.mxu1 %v678_v30 }
  0x26   : > { %2976 = vmatpush.msra.mxu3 %v678_v30  ;;  %v2553_v30 = vld [vmem:[%s4165_s5 + $0x48] sm:$0xf] }
  0x27   : > { %706 = vmatpush.msra.mxu1 %v677_v31 }
  0x28   : > { %2977 = vmatpush.msra.mxu3 %v677_v31  ;;  %v2887_v31 = vld [vmem:[%s4165_s5 + $0x50] sm:$0xf0] }
  0x29   : > { %2468 = vmatmul.msk.f32.gmra.mxu0 %vm560_vm0, %v545_v9  ;;  %707 = vmatpush.msra.mxu1 %v676_v33  ;;  %v2594_v9 = vor.u32 %v2895_v4, %v2591_v6  ;;  %v2690_v4 = vor.u32 %v2919_v2, %v2687_v3  ;;  %v2675_v6 = vld [vmem:[%s4165_s5 + $0x144] sm:$0xf0] }
  0x2a   : > { %2978 = vmatpush.msra.mxu3 %v676_v33  ;;  %v2554_v33 = vor.u32 %v2887_v31, %v2553_v30  ;;  %v2615_v30 = vld [vmem:[%s4165_s5 + $0xcc] sm:$0xf0] }
  0x2b   : > { %708 = vmatpush.msra.mxu1 %v675_v34  ;;  %1290 = vmatpush.bf16.msrb.mxu0 %v2594_v9  ;;  %v2913_v9 = vld [vmem:[%s4165_s5 + $0x124] sm:$0xf] }
  0x2c   : > { %2979 = vmatpush.msra.mxu3 %v675_v34  ;;  %v2555_v34 = vld [vmem:[%s4165_s5 + $0x54] sm:$0xf0] }
  0x2d   : > { %709 = vmatpush.msra.mxu1 %v674_v35 }
  0x2e   : > { %2980 = vmatpush.msra.mxu3 %v674_v35 }
  0x2f   : > { %1191 = vmatpush.bf16.msrb.mxu1 %v2602_v59  ;;  %v2518_v59 = vor.u32 %v2878_v57, %v2517_v56 }
  0x30   : > { %1240 = vmatpush.bf16.msrb.mxu3 %v2698_v52  ;;  %v2530_v52 = vor.u32 %v2881_v50, %v2529_v49 }
  0x31   : > { %2469 = vmatmul.msk.f32.gmra.mxu0 %vm560_vm0, %v546_v10  ;;  %v2662_v10 = vor.u32 %v2914_v8, %v2661_v7 }
  0x33   : > { %1192 = vmatpush.bf16.msrb.mxu1 %v2590_v5  ;;  %v2916_v5 = vld [vmem:[%s4165_s5 + $0x13c] sm:$0xf] }
  0x34   : > { %1241 = vmatpush.bf16.msrb.mxu3 %v2686_v55  ;;  %v2678_v7 = vor.u32 %v2916_v5, %v2675_v6  ;;  %v2924_v5 = vld [vmem:[%s4165_s5 + $0x178] sm:$0xf0] }
  0x38   : > { %1242 = vmatpush.bf16.msrb.mxu3 %v2674_v1 }
  0x39   : > { %2470 = vmatmul.msk.f32.gmra.mxu0 %vm560_vm0, %v547_v11  ;;  %v2577_v11 = vld [vmem:[%s4165_s5 + $0x78] sm:$0xf] }
  0x3c   : > { %1243 = vmatpush.bf16.msrb.mxu3 %v2662_v10  ;;  %v2663_v10 = vld [vmem:[%s4165_s5 + $0x12c] sm:$0xf0] }
  0x41   : > { %2471 = vmatmul.msk.f32.gmra.mxu0 %vm560_vm0, %v548_v12  ;;  %v2893_v12 = vld [vmem:[%s4165_s5 + $0x80] sm:$0xf0] }
  0x49   : > { %2472 = vmatmul.msk.f32.gmra.mxu0 %vm560_vm0, %v549_v13  ;;  %v2892_v13 = vld [vmem:[%s4165_s5 + $0x7c] sm:$0xf] }
  0x51   : > { %2473 = vmatmul.msk.f32.gmra.mxu0 %vm560_vm0, %v550_v14  ;;  %v2578_v14 = vor.u32 %v2893_v12, %v2577_v11  ;;  %v2666_v11 = vor.u32 %v2913_v9, %v2663_v10  ;;  %v3396_v12 = vld [vmem:[%s3393_s19] sm:$0xff]  ;;  %v3479_v10 = vld [vmem:[%s3393_s19 + $0x28] sm:$0xff] }
  0x53   : > { %1193 = vmatpush.bf16.msrb.mxu1 %v2578_v14  ;;  %2983 = vmatpush.bf16.msra.mxu2 %v2578_v14  ;;  %v2651_v14 = vld [vmem:[%s4165_s5 + $0x114] sm:$0xf0] }
  0x59   : > { %2474 = vmatmul.msk.f32.gmra.mxu0 %vm560_vm0, %v551_v15  ;;  %v2579_v15 = vld [vmem:[%s4165_s5 + $0x84] sm:$0xf0] }
  0x5a   : > { %v2582_v16 = vor.u32 %v2892_v13, %v2579_v15  ;;  %v2910_v13 = vld [vmem:[%s4165_s5 + $0x10c] sm:$0xf] }
  0x5c   : > { %1291 = vmatpush.bf16.msrb.mxu0 %v2582_v16  ;;  %v2654_v16 = vor.u32 %v2910_v13, %v2651_v14  ;;  %v2693_v13 = vld [vmem:[%s4165_s5 + $0x158] sm:$0xf]  ;;  %v2921_v14 = vld [vmem:[%s4165_s5 + $0x160] sm:$0xf0] }
  0x60   : > { %1292 = vmatpush.bf16.msrb.mxu0 %v2570_v26 }
  0x61   : > { %2475 = vmatmul.msk.f32.gmra.mxu0 %vm560_vm0, %v552_v17  ;;  %v2649_v17 = vld [vmem:[%s4165_s5 + $0x108] sm:$0xf] }
  0x62   : > { %v2650_v20 = vor.u32 %v2911_v18, %v2649_v17  ;;  %v3407_v17 = vld [vmem:[%s4164_s4] ss:$0 sm:$0xff]  ;;  %v2907_v18 = vld [vmem:[%s4165_s5 + $0xf4] sm:$0xf] }
  0x64   : > { %1244 = vmatpush.bf16.msrb.mxu3 %v2650_v20 }
  0x69   : > { %2476 = vmatmul.msk.f32.gmra.mxu0 %vm560_vm0, %v553_v22  ;;  %v2890_v22 = vld [vmem:[%s4165_s5 + $0x68] sm:$0xf0] }
  0x6a   : > { %v2566_v24 = vor.u32 %v2890_v22, %v2565_v21  ;;  %v2904_v22 = vld [vmem:[%s4165_s5 + $0xdc] sm:$0xf] }
  0x6b   : > { %v2630_v25 = vor.u32 %v2904_v22, %v2627_v23  ;;  %v2681_v22 = vld [vmem:[%s4165_s5 + $0x140] sm:$0xf] }
  0x6c   : > { %1194 = vmatpush.bf16.msrb.mxu1 %v2566_v24  ;;  %2984 = vmatpush.bf16.msra.mxu2 %v2566_v24 }
  0x70   : > { %1195 = vmatpush.bf16.msrb.mxu1 %v2554_v33  ;;  %2985 = vmatpush.bf16.msra.mxu2 %v2554_v33 }
  0x71   : > { %2477 = vmatmul.msk.f32.gmra.mxu0 %vm560_vm0, %v554_v27  ;;  %v2637_v27 = vld [vmem:[%s4165_s5 + $0xf0] sm:$0xf] }
  0x72   : > { %v2638_v29 = vor.u32 %v2908_v28, %v2637_v27 }
  0x74   : > { %1245 = vmatpush.bf16.msrb.mxu3 %v2638_v29  ;;  %v2901_v29 = vld [vmem:[%s4165_s5 + $0xc4] sm:$0xf] }
  0x75   : > { %v2618_v31 = vor.u32 %v2901_v29, %v2615_v30  ;;  %v2669_v29 = vld [vmem:[%s4165_s5 + $0x128] sm:$0xf] }
  0x79   : > { %2478 = vmatmul.msk.f32.gmra.mxu0 %vm560_vm0, %v555_v32  ;;  %v2886_v32 = vld [vmem:[%s4165_s5 + $0x4c] sm:$0xf] }
  0x7a   : > { %v2558_v35 = vor.u32 %v2886_v32, %v2555_v34 }
  0x7c   : > { %1293 = vmatpush.bf16.msrb.mxu0 %v2558_v35  ;;  %v3433_v35 = vld [vmem:[%s3393_s19 + $0x8] sm:$0xff] }
  0x81   : > { %2479 = vmatmul.msk.f32.gmra.mxu0 %vm560_vm0, %v556_v36  ;;  %v2625_v36 = vld [vmem:[%s4165_s5 + $0xd8] sm:$0xf] }
  0x89   : > { %2480 = vmatmul.msk.f32.gmra.mxu0 %vm560_vm0, %v557_v37  ;;  %v2905_v37 = vld [vmem:[%s4165_s5 + $0xe0] sm:$0xf0] }
  0x91   : > { %2481 = vmatmul.msk.f32.gmra.mxu0 %vm560_vm0, %v558_v38 }
  0x99   : > { %2482 = vmatmul.msk.f32.gmra.mxu0 %vm560_vm0, %v559_v39  ;;  %v2626_v39 = vor.u32 %v2905_v37, %v2625_v36 }
  0x9b   : > { %1246 = vmatpush.bf16.msrb.mxu3 %v2626_v39 }
  0x9e   : > { %v626_v40 = vpop.f32.mrf.mxu0 }
  0x9f   : > { %710 = vmatmul.f32.vlgmr.msra.gmra.mxu1 %v626_v40  ;;  %v2541_v40 = vld [vmem:[%s4165_s5 + $0x30] sm:$0xf] }
  0xa6   : > { %v629_v41 = vpop.f32.mrf.mxu0 }
  0xa7   : > { %713 = vmatmul.f32.gmra.mxu1 %v629_v41  ;;  %v2884_v41 = vld [vmem:[%s4165_s5 + $0x38] sm:$0xf0] }
  0xae   : > { %v632_v42 = vpop.f32.mrf.mxu0 }
  0xaf   : > { %716 = vmatmul.f32.gmra.mxu1 %v632_v42  ;;  %v2883_v42 = vld [vmem:[%s4165_s5 + $0x34] sm:$0xf] }
  0xb6   : > { %v635_v43 = vpop.f32.mrf.mxu0 }
  0xb7   : > { %719 = vmatmul.f32.gmra.mxu1 %v635_v43  ;;  %v2542_v43 = vor.u32 %v2884_v41, %v2541_v40 }
  0xb9   : > { %1196 = vmatpush.bf16.msrb.mxu1 %v2542_v43  ;;  %2986 = vmatpush.bf16.msra.mxu2 %v2542_v43 }
  0xbd   : > { %1197 = vmatpush.bf16.msrb.mxu1 %v2530_v52  ;;  %2987 = vmatpush.bf16.msra.mxu2 %v2530_v52 }
  0xbe   : > { %v638_v44 = vpop.f32.mrf.mxu0 }
  0xbf   : > { %722 = vmatmul.f32.vlgmr.msra.gmra.mxu3 %v638_v44  ;;  %v2543_v44 = vld [vmem:[%s4165_s5 + $0x3c] sm:$0xf0] }
  0xc1   : > { %1198 = vmatpush.bf16.msrb.mxu1 %v2518_v59  ;;  %2988 = vmatpush.bf16.msra.mxu2 %v2518_v59 }
  0xc6   : > { %v641_v45 = vpop.f32.mrf.mxu0 }
  0xc7   : > { %725 = vmatmul.f32.gmra.mxu3 %v641_v45  ;;  %v2546_v45 = vor.u32 %v2883_v42, %v2543_v44 }
  0xc9   : > { %1294 = vmatpush.bf16.msrb.mxu0 %v2546_v45  ;;  %v3443_v45 = vld [vmem:[%s3393_s19 + $0x10] sm:$0xff] }
  0xce   : > { %v644_v46 = vpop.f32.mrf.mxu0 }
  0xcf   : > { %728 = vmatmul.f32.gmra.mxu3 %v644_v46  ;;  %v2613_v46 = vld [vmem:[%s4165_s5 + $0xc0] sm:$0xf] }
  0xd6   : > { %v647_v47 = vpop.f32.mrf.mxu0 }
  0xd7   : > { %731 = vmatmul.f32.gmra.mxu3 %v647_v47  ;;  %v2902_v47 = vld [vmem:[%s4165_s5 + $0xc8] sm:$0xf0] }
  0xde   : > { %v650_v48 = vpop.f32.mrf.mxu0 }
  0xdf   : > { %734 = vmatmul.f32.gmra.mxu3 %v650_v48  ;;  %v2614_v48 = vor.u32 %v2902_v47, %v2613_v46 }
  0xe1   : > { %1247 = vmatpush.bf16.msrb.mxu3 %v2614_v48 }
  0xe6   : > { %v653_v51 = vpop.f32.mrf.mxu0 }
  0xe7   : > { %737 = vmatmul.f32.gmra.mxu3 %v653_v51  ;;  %v2880_v51 = vld [vmem:[%s4165_s5 + $0x1c] sm:$0xf] }
  0xe8   : > { %v2534_v54 = vor.u32 %v2880_v51, %v2531_v53  ;;  %v3451_v51 = vld [vmem:[%s3393_s19 + $0x18] sm:$0xff] }
  0xea   : > { %1295 = vmatpush.bf16.msrb.mxu0 %v2534_v54 }
  0xee   : > { %v656_v0 = vpop.f32.mrf.mxu0  ;;  %1296 = vmatpush.bf16.msrb.mxu0 %v2522_v61  ;;  %v3462_v61 = vld [vmem:[%s3393_s19 + $0x20] sm:$0xff] }
  0xef   : > { %740 = vmatmul.f32.gmra.mxu3 %v656_v0  ;;  %v2702_v0 = vor.u32 %v2922_v62, %v2699_v63 }
  0xf1   : > { %1338 = vmatpush.bf16.msra.mxu1 %v2702_v0 }
  0xf5   : > { %1339 = vmatpush.bf16.msra.mxu1 %v2690_v4  ;;  %v2705_v4 = vld [vmem:[%s4165_s5 + $0x170] sm:$0xf] }
  0xf6   : > { %v659_v19 = vpop.f32.mrf.mxu0 }
  0xf7   : > { %743 = vmatmul.f32.gmra.mxu3 %v659_v19  ;;  %v2639_v19 = vld [vmem:[%s4165_s5 + $0xfc] sm:$0xf0] }
  0xf8   : > { %v2642_v20 = vor.u32 %v2907_v18, %v2639_v19 }
  0xf9   : > { %1340 = vmatpush.bf16.msra.mxu1 %v2678_v7  ;;  %v2706_v7 = vor.u32 %v2924_v5, %v2705_v4  ;;  %v2549_v5 = vld [vmem:[%s4165_s5 + $0x38] sm:$0xf] }
  0xfb   : > { %1436 = vmatpush.bf16.msra.mxu3 %v2706_v7  ;;  %v2621_v7 = vld [vmem:[%s4165_s5 + $0xc8] sm:$0xf] }
  0xfd   : > { %1341 = vmatpush.bf16.msra.mxu1 %v2666_v11 }
  0xfe   : > { %v662_v38 = vpop.f32.mrf.mxu0 }
  0xff   : > { %746 = vmatmul.f32.gmra.mxu3 %v662_v38 }
 0x101   : > { %1342 = vmatpush.bf16.msra.mxu1 %v2654_v16 }
 0x105   : > { %1343 = vmatpush.bf16.msra.mxu1 %v2642_v20  ;;  %v2609_v20 = vld [vmem:[%s4165_s5 + $0xb0] sm:$0xf] }
 0x106   : > { %v665_v55 = vpop.f32.mrf.mxu0 }
 0x107   : > { %749 = vmatmul.f32.gmra.mxu3 %v665_v55 }
 0x109   : > { %1344 = vmatpush.bf16.msra.mxu1 %v2630_v25  ;;  %v2918_v25 = vld [vmem:[%s4165_s5 + $0x148] sm:$0xf0] }
 0x10d   : > { %1345 = vmatpush.bf16.msra.mxu1 %v2618_v31  ;;  %v2915_v31 = vld [vmem:[%s4165_s5 + $0x130] sm:$0xf0] }
 0x10e   : > { %v668_v1 = vpop.f32.mrf.mxu0 }
 0x10f   : > { %752 = vmatmul.f32.gmra.mxu3 %v668_v1 }
 0x116   : > { %v671_v8 = vpop.f32.mrf.mxu0 }
 0x117   : > { %755 = vmatmul.f32.gmra.mxu3 %v671_v8 }
 0x11c   : > { %v711_v15 = vpop.f32.mrf.mxu1 }
 0x11d   : > { %v712_v21 = vadd.f32 %v3407_v17, %v711_v15  ;;  %v2694_v15 = vor.u32 %v2921_v14, %v2693_v13  ;;  %v2537_v14 = vld [vmem:[%s4165_s5 + $0x20] sm:$0xf] }
 0x11f   : > { %1248 = vmatmul.bf16.vlgmr.msrb.gmra.mxu3 %v3396_v12  ;;  %v759_v26 = vpack.c.bf16 %v712_v21, %v712_v21  ;;  %v2900_v21 = vld [vmem:[%s4165_s5 + $0xb8] sm:$0xf0] }
 0x120   : > { %1437 = vmatpush.bf16.msra.mxu3 %v2694_v15  ;;  %v2882_v15 = vld [vmem:[%s4165_s5 + $0x28] sm:$0xf0] }
 0x121   : > { %v791_v32 = vunpack.c.l.b16 %v759_v26  ;;  %v2682_v26 = vor.u32 %v2918_v25, %v2681_v22  ;;  %v3585_v22 = vld [vmem:[%s3393_s19 + $0x38] sm:$0xff]  ;;  %v2879_v25 = vld [vmem:[%s4165_s5 + $0x10] sm:$0xf0] }
 0x124   : > { %v714_v24 = vpop.f32.mrf.mxu1  ;;  %1438 = vmatpush.bf16.msra.mxu3 %v2682_v26 }
 0x125   : > { %v715_v27 = vadd.f32 %v3407_v17, %v714_v24  ;;  %v2610_v24 = vor.u32 %v2900_v21, %v2609_v20 }
 0x127   : > { %v760_v28 = vpack.c.bf16 %v715_v27, %v715_v27  ;;  %1387 = vmatpush.bf16.msrb.mxu2 %v2610_v24  ;;  %v2597_v27 = vld [vmem:[%s4165_s5 + $0x98] sm:$0xf]  ;;  %v2525_v24 = vld [vmem:[%s4165_s5 + $0x8] sm:$0xf] }
 0x128   : > { %v2526_v26 = vor.u32 %v2879_v25, %v2525_v24 }
 0x129   : > { %v792_v33 = vunpack.c.l.b16 %v760_v28  ;;  %v2897_v28 = vld [vmem:[%s4165_s5 + $0xa0] sm:$0xf0] }
 0x12a   : > { %v2598_v30 = vor.u32 %v2897_v28, %v2597_v27 }
 0x12b   : > { %v3430_v34 = vpack.c.b16 %v792_v33, %v791_v32  ;;  %v2670_v33 = vor.u32 %v2915_v31, %v2669_v29 }
 0x12c   : > { %v717_v36 = vpop.f32.mrf.mxu1  ;;  %1388 = vmatpush.bf16.msrb.mxu2 %v2598_v30 }
 0x12d   : > { %1199 = vmatmul.bf16.vlgmr.msrb.gmra.mxu1 %v3430_v34  ;;  %1297 = vmatmul.bf16.vlgmr.msrb.gmra.mxu0 %v3430_v34  ;;  %v718_v37 = vadd.f32 %v3407_v17, %v717_v36  ;;  %v2585_v36 = vld [vmem:[%s4165_s5 + $0x80] sm:$0xf] }
 0x12e   : > { %1439 = vmatpush.bf16.msra.mxu3 %v2670_v33 }
 0x12f   : > { %1253 = vmatmul.bf16.gmra.mxu3 %v3433_v35  ;;  %v761_v39 = vpack.c.bf16 %v718_v37, %v718_v37  ;;  %v2894_v37 = vld [vmem:[%s4165_s5 + $0x88] sm:$0xf0] }
 0x131   : > { %v793_v42 = vunpack.c.l.b16 %v761_v39  ;;  %v2586_v39 = vor.u32 %v2894_v37, %v2585_v36 }
 0x133   : > { %1389 = vmatpush.bf16.msrb.mxu2 %v2586_v39 }
 0x134   : > { %v720_v38 = vpop.f32.mrf.mxu1 }
 0x135   : > { %v721_v40 = vadd.f32 %v3407_v17, %v720_v38 }
 0x137   : > { %v762_v41 = vpack.c.bf16 %v721_v40, %v721_v40  ;;  %v2657_v40 = vld [vmem:[%s4165_s5 + $0x110] sm:$0xf] }
 0x139   : > { %v794_v43 = vunpack.c.l.b16 %v762_v41  ;;  %v2912_v41 = vld [vmem:[%s4165_s5 + $0x118] sm:$0xf0] }
 0x13b   : > { %v3440_v44 = vpack.c.b16 %v794_v43, %v793_v42 }
 0x13d   : > { %1204 = vmatmul.bf16.gmra.mxu1 %v3440_v44  ;;  %1302 = vmatmul.bf16.gmra.mxu0 %v3440_v44 }
 0x13f   : > { %1258 = vmatmul.bf16.gmra.mxu3 %v3443_v45 }
 0x142   : > { %v723_v46 = vpop.f32.mrf.mxu3 }
 0x143   : > { %v724_v47 = vadd.f32 %v3407_v17, %v723_v46  ;;  %v3532_v46 = vld [vmem:[%s3393_s19 + $0x30] sm:$0xff]  ;;  %s4093_s19 = scalar_lea.vmem %s4175_s15, %s2466_s30 }
 0x145   : > { %v763_v49 = vpack.c.bf16 %v724_v47, %v724_v47  ;;  %v2658_v47 = vor.u32 %v2912_v41, %v2657_v40 }
 0x147   : > { %v795_v53 = vunpack.c.l.b16 %v763_v49  ;;  %1440 = vmatpush.bf16.msra.mxu3 %v2658_v47  ;;  %v2573_v49 = vld [vmem:[%s4165_s5 + $0x68] sm:$0xf] }
 0x14a   : > { %v726_v48 = vpop.f32.mrf.mxu3 }
 0x14b   : > { %v727_v50 = vadd.f32 %v3407_v17, %v726_v48 }
 0x14d   : > { %v764_v52 = vpack.c.bf16 %v727_v50, %v727_v50  ;;  %1346 = vmatmul.bf16.vlgmr.msra.gmra.mxu1 %v3396_v12  ;;  %v2891_v50 = vld [vmem:[%s4165_s5 + $0x70] sm:$0xf0] }
 0x14f   : > { %v796_v54 = vunpack.c.l.b16 %v764_v52  ;;  %1263 = vmatmul.bf16.gmra.mxu3 %v3451_v51  ;;  %v2645_v52 = vld [vmem:[%s4165_s5 + $0xf8] sm:$0xf] }
 0x151   : > { %v3455_v55 = vpack.c.b16 %v796_v54, %v795_v53  ;;  %v2574_v53 = vor.u32 %v2891_v50, %v2573_v49  ;;  %v2909_v54 = vld [vmem:[%s4165_s5 + $0x100] sm:$0xf0] }
 0x152   : > { %v729_v56 = vpop.f32.mrf.mxu3 }
 0x153   : > { %1209 = vmatmul.bf16.vlgmr.msra.gmra.mxu2 %v3455_v55  ;;  %1307 = vmatmul.bf16.gmra.mxu0 %v3455_v55  ;;  %v730_v57 = vadd.f32 %v3407_v17, %v729_v56 }
 0x154   : > { %1390 = vmatpush.bf16.msrb.mxu2 %v2574_v53 }
 0x155   : > { %v765_v59 = vpack.c.bf16 %v730_v57, %v730_v57 }
 0x157   : > { %v797_v63 = vunpack.c.l.b16 %v765_v59 }
 0x15a   : > { %v732_v58 = vpop.f32.mrf.mxu3 }
 0x15b   : > { %v733_v60 = vadd.f32 %v3407_v17, %v732_v58  ;;  %v2646_v58 = vor.u32 %v2909_v54, %v2645_v52 }
 0x15d   : > { %v766_v62 = vpack.c.bf16 %v733_v60, %v733_v60  ;;  %1351 = vmatmul.bf16.gmra.mxu1 %v3433_v35  ;;  %1441 = vmatpush.bf16.msra.mxu3 %v2646_v58  ;;  %v2561_v60 = vld [vmem:[%s4165_s5 + $0x50] sm:$0xf] }
 0x15f   : > { %v798_v0 = vunpack.c.l.b16 %v766_v62  ;;  %1268 = vmatmul.bf16.gmra.mxu3 %v3462_v61  ;;  %v2888_v62 = vld [vmem:[%s4165_s5 + $0x58] sm:$0xf0] }
 0x161   : > { %v3466_v1 = vpack.c.b16 %v798_v0, %v797_v63  ;;  %v2633_v63 = vld [vmem:[%s4165_s5 + $0xe0] sm:$0xf] }
 0x162   : > { %v735_v2 = vpop.f32.mrf.mxu3 }
 0x163   : > { %1214 = vmatmul.bf16.gmra.mxu2 %v3466_v1  ;;  %1312 = vmatmul.bf16.gmra.mxu0 %v3466_v1  ;;  %v736_v3 = vadd.f32 %v3407_v17, %v735_v2  ;;  %v2562_v2 = vor.u32 %v2888_v62, %v2561_v60 }
 0x165   : > { %v767_v8 = vpack.c.bf16 %v736_v3, %v736_v3  ;;  %v2906_v3 = vld [vmem:[%s4165_s5 + $0xe8] sm:$0xf0]  ;;  %1391 = vmatpush.bf16.msrb.mxu2 %v2562_v2 }
 0x166   : > { %v2634_v4 = vor.u32 %v2906_v3, %v2633_v63 }
 0x167   : > { %v799_v16 = vunpack.c.l.b16 %v767_v8 }
 0x168   : > { %1442 = vmatpush.bf16.msra.mxu3 %v2634_v4 }
 0x16a   : > { %v738_v6 = vpop.f32.mrf.mxu3 }
 0x16b   : > { %v739_v9 = vadd.f32 %v3407_v17, %v738_v6  ;;  %v2885_v6 = vld [vmem:[%s4165_s5 + $0x40] sm:$0xf0] }
 0x16c   : > { %v2550_v8 = vor.u32 %v2885_v6, %v2549_v5 }
 0x16d   : > { %v768_v11 = vpack.c.bf16 %v739_v9, %v739_v9  ;;  %1356 = vmatmul.bf16.gmra.mxu1 %v3443_v45  ;;  %v2903_v9 = vld [vmem:[%s4165_s5 + $0xd0] sm:$0xf0] }
 0x16e   : > { %1392 = vmatpush.bf16.msrb.mxu2 %v2550_v8 }
 0x16f   : > { %v800_v18 = vunpack.c.l.b16 %v768_v11  ;;  %1273 = vmatmul.bf16.gmra.mxu3 %v3479_v10  ;;  %v2622_v11 = vor.u32 %v2903_v9, %v2621_v7 }
 0x171   : > { %v3489_v19 = vpack.c.b16 %v800_v18, %v799_v16  ;;  %1443 = vmatpush.bf16.msra.mxu3 %v2622_v11  ;;  %v2538_v18 = vor.u32 %v2882_v15, %v2537_v14 }
 0x172   : > { %v741_v23 = vpop.f32.mrf.mxu3 }
 0x173   : > { %1219 = vmatmul.bf16.gmra.mxu2 %v3489_v19  ;;  %1317 = vmatmul.bf16.gmra.mxu0 %v3489_v19  ;;  %v742_v32 = vadd.f32 %v3407_v17, %v741_v23 }
 0x174   : > { %1393 = vmatpush.bf16.msrb.mxu2 %v2538_v18 }
 0x175   : > { %v769_v42 = vpack.c.bf16 %v742_v32, %v742_v32 }
 0x177   : > { %v801_v56 = vunpack.c.l.b16 %v769_v42 }
 0x178   : > { %1394 = vmatpush.bf16.msrb.mxu2 %v2526_v26 }
 0x17a   : > { %v744_v38 = vpop.f32.mrf.mxu3 }
 0x17b   : > { %v745_v43 = vadd.f32 %v3407_v17, %v744_v38 }
 0x17d   : > { %v770_v48 = vpack.c.bf16 %v745_v43, %v745_v43  ;;  %1361 = vmatmul.bf16.gmra.mxu1 %v3451_v51 }
 0x17f   : > { %v802_v57 = vunpack.c.l.b16 %v770_v48  ;;  %1278 = vmatmul.bf16.gmra.mxu3 %v3532_v46 }
 0x181   : > { %v3548_v59 = vpack.c.b16 %v802_v57, %v801_v56 }
 0x182   : > { %v747_v0 = vpop.f32.mrf.mxu3 }
 0x183   : > { %1224 = vmatmul.bf16.gmra.mxu2 %v3548_v59  ;;  %1322 = vmatmul.bf16.gmra.mxu0 %v3548_v59  ;;  %v748_v13 = vadd.f32 %v3407_v17, %v747_v0 }
 0x185   : > { %v771_v20 = vpack.c.bf16 %v748_v13, %v748_v13 }
 0x187   : > { %v803_v27 = vunpack.c.l.b16 %v771_v20 }
 0x18a   : > { %v750_v16 = vpop.f32.mrf.mxu3 }
 0x18b   : > { %v751_v21 = vadd.f32 %v3407_v17, %v750_v16 }
 0x18d   : > { %v772_v23 = vpack.c.bf16 %v751_v21, %v751_v21  ;;  %1366 = vmatmul.bf16.gmra.mxu1 %v3462_v61 }
 0x18f   : > { %v804_v28 = vunpack.c.l.b16 %v772_v23  ;;  %1283 = vmatmul.bf16.gmra.mxu3 %v3585_v22 }
 0x191   : > { %v3595_v29 = vpack.c.b16 %v804_v28, %v803_v27 }
 0x192   : > { %v753_v30 = vpop.f32.mrf.mxu3 }
 0x193   : > { %1229 = vmatmul.bf16.gmra.mxu2 %v3595_v29  ;;  %1327 = vmatmul.bf16.gmra.mxu0 %v3595_v29  ;;  %v754_v31 = vadd.f32 %v3407_v17, %v753_v30 }
 0x195   : > { %v773_v33 = vpack.c.bf16 %v754_v31, %v754_v31 }
 0x197   : > { %v805_v38 = vunpack.c.l.b16 %v773_v33 }
 0x19a   : > { %v756_v32 = vpop.f32.mrf.mxu3 }
 0x19b   : > { %v757_v36 = vadd.f32 %v3407_v17, %v756_v32 }
 0x19d   : > { %v774_v37 = vpack.c.bf16 %v757_v36, %v757_v36  ;;  %1371 = vmatmul.bf16.gmra.mxu1 %v3479_v10 }
 0x19f   : > { %v806_v39 = vunpack.c.l.b16 %v774_v37  ;;  %1444 = vmatmul.bf16.vlgmr.msra.gmra.mxu3 %v3396_v12 }
 0x1a1   : > { %v3603_v40 = vpack.c.b16 %v806_v39, %v805_v38 }
 0x1a2   : > { %v1249_v41 = vpop.f32.mrf.mxu3 }
 0x1a3   : > { %1234 = vmatmul.bf16.gmra.mxu2 %v3603_v40  ;;  %1332 = vmatmul.bf16.gmra.mxu0 %v3603_v40 }
 0x1aa   : > { %v1200_v42 = vpop.f32.mrf.mxu1  ;;  %v1251_v43 = vpop.f32.mrf.mxu3 }
 0x1ab   : > { %v1298_v17 = vpop.f32.mrf.mxu0  ;;  %v3609_v48 = vadd.f32 %v1249_v41, %v1200_v42 }
 0x1ad   : > { %1376 = vmatmul.bf16.gmra.mxu1 %v3532_v46 }
 0x1af   : > { %1449 = vmatmul.bf16.gmra.mxu3 %v3433_v35 }
 0x1b2   : > { %v1202_v47 = vpop.f32.mrf.mxu1  ;;  %v1254_v12 = vpop.f32.mrf.mxu3 }
 0x1b3   : > { %v3611_v49 = vadd.f32 %v1251_v43, %v1202_v47  ;;  %1395 = vmatmul.bf16.vlgmr.msrb.gmra.mxu2 %v3430_v34  ;;  %v3616_v52 = vpop.f32.mrf.mxu0 }
 0x1b5   : > { %v1501_v50 = vpack.c.bf16 %v3611_v49, %v3609_v48  ;;  %v3729_v48 = vld [vmem:[%s4173_s13 + $0x10] sm:$0xff] }
 0x1b6   : > { %4180 = vst [vmem:[#allocation2_spill] sm:$0xff] %v3729_v48 }
 0x1ba   : > { %v1205_v53 = vpop.f32.mrf.mxu1  ;;  %v1256_v54 = vpop.f32.mrf.mxu3 }
 0x1bb   : > { %v3620_v56 = vadd.f32 %v1254_v12, %v1205_v53  ;;  %v1303_v58 = vpop.f32.mrf.mxu0 }
 0x1bd   : > { %1381 = vmatmul.bf16.gmra.mxu1 %v3585_v22 }
 0x1bf   : > { %1454 = vmatmul.bf16.gmra.mxu3 %v3443_v45 }
 0x1c2   : > { %v1207_v35 = vpop.f32.mrf.mxu1  ;;  %v1259_v34 = vpop.f32.mrf.mxu3 }
 0x1c3   : > { %v3622_v57 = vadd.f32 %v1256_v54, %v1207_v35  ;;  %1400 = vmatmul.bf16.gmra.mxu2 %v3440_v44  ;;  %v3629_v2 = vpop.f32.mrf.mxu0 }
 0x1c5   : > { %v1502_v60 = vpack.c.bf16 %v3622_v57, %v3620_v56  ;;  %v3723_v56 = vld [vmem:[%s4173_s13 + $0x8] sm:$0xff] }
 0x1ca   : > { %v1347_v62 = vpop.f32.mrf.mxu1  ;;  %v1261_v0 = vpop.f32.mrf.mxu3 }
 0x1cb   : > { %v3627_v63 = vadd.f32 %v1347_v62, %v1298_v17 }
 0x1cf   : > { %1459 = vmatmul.bf16.gmra.mxu3 %v3451_v51 }
 0x1d0   : > { %v1308_v4 = vpop.f32.mrf.mxu0 }
 0x1d2   : > { %v3632_v45 = vpop.f32.mrf.mxu1  ;;  %v1264_v3 = vpop.f32.mrf.mxu3 }
 0x1d3   : > { %1405 = vmatmul.bf16.gmra.mxu2 %v3455_v55 }
 0x1d6   : > { %v1210_v44 = vpop.f32.mrf.mxu2 }
 0x1d7   : > { %v3635_v5 = vadd.f32 %v1259_v34, %v1210_v44 }
 0x1d8   : > { %v3642_v13 = vpop.f32.mrf.mxu0 }
 0x1da   : > { %v1352_v6 = vpop.f32.mrf.mxu1  ;;  %v1266_v8 = vpop.f32.mrf.mxu3 }
 0x1db   : > { %v3637_v7 = vadd.f32 %v1352_v6, %v1303_v58 }
 0x1de   : > { %v1212_v9 = vpop.f32.mrf.mxu2 }
 0x1df   : > { %v3639_v11 = vadd.f32 %v1261_v0, %v1212_v9  ;;  %1464 = vmatmul.bf16.gmra.mxu3 %v3462_v61 }
 0x1e0   : > { %v1313_v18 = vpop.f32.mrf.mxu0 }
 0x1e1   : > { %v1503_v51 = vpack.c.bf16 %v3639_v11, %v3635_v5 }
 0x1e2   : > { %v3646_v55 = vpop.f32.mrf.mxu1  ;;  %v1269_v14 = vpop.f32.mrf.mxu3 }
 0x1e3   : > { %1410 = vmatmul.bf16.gmra.mxu2 %v3466_v1 }
 0x1e6   : > { %v1215_v15 = vpop.f32.mrf.mxu2 }
 0x1e7   : > { %v3649_v16 = vadd.f32 %v1264_v3, %v1215_v15 }
 0x1e8   : > { %v3661_v27 = vpop.f32.mrf.mxu0 }
 0x1ea   : > { %v1357_v20 = vpop.f32.mrf.mxu1  ;;  %v1271_v23 = vpop.f32.mrf.mxu3 }
 0x1eb   : > { %v3651_v21 = vadd.f32 %v1357_v20, %v1308_v4 }
 0x1ee   : > { %v1217_v24 = vpop.f32.mrf.mxu2 }
 0x1ef   : > { %v3653_v61 = vadd.f32 %v1266_v8, %v1217_v24  ;;  %1469 = vmatmul.bf16.gmra.mxu3 %v3479_v10 }
 0x1f0   : > { %v1318_v36 = vpop.f32.mrf.mxu0 }
 0x1f1   : > { %v1504_v25 = vpack.c.bf16 %v3653_v61, %v3649_v16 }
 0x1f2   : > { %v3658_v26 = vpop.f32.mrf.mxu1  ;;  %v1274_v1 = vpop.f32.mrf.mxu3 }
 0x1f3   : > { %1415 = vmatmul.bf16.gmra.mxu2 %v3489_v19 }
 0x1f6   : > { %v1220_v28 = vpop.f32.mrf.mxu2 }
 0x1f7   : > { %v1270_v30 = vadd.f32 %v1269_v14, %v1220_v28 }
 0x1f8   : > { %v3669_v19 = vpop.f32.mrf.mxu0 }
 0x1fa   : > { %v1362_v31 = vpop.f32.mrf.mxu1  ;;  %v1276_v33 = vpop.f32.mrf.mxu3 }
 0x1fb   : > { %v3663_v32 = vadd.f32 %v1362_v31, %v1313_v18 }
 0x1fe   : > { %v1222_v37 = vpop.f32.mrf.mxu2 }
 0x1ff   : > { %1474 = vmatmul.bf16.gmra.mxu3 %v3532_v46 }
 0x200   : > { %v1323_v47 = vpop.f32.mrf.mxu0 }
 0x202   : > { %v3666_v10 = vpop.f32.mrf.mxu1  ;;  %v1279_v38 = vpop.f32.mrf.mxu3 }
 0x203   : > { %1420 = vmatmul.bf16.gmra.mxu2 %v3548_v59 }
 0x206   : > { %v1225_v39 = vpop.f32.mrf.mxu2 }
 0x208   : > { %v3679_v34 = vpop.f32.mrf.mxu0 }
 0x20a   : > { %v1367_v41 = vpop.f32.mrf.mxu1  ;;  %v1281_v43 = vpop.f32.mrf.mxu3 }
 0x20b   : > { %v3671_v42 = vadd.f32 %v1367_v41, %v1318_v36  ;;  %v1275_v41 = vadd.f32 %v1274_v1, %v1225_v39 }
 0x20e   : > { %v1227_v17 = vpop.f32.mrf.mxu2 }
 0x20f   : > { %1479 = vmatmul.bf16.gmra.mxu3 %v3585_v22  ;;  %v1277_v28 = vadd.f32 %v1276_v33, %v1227_v17 }
 0x210   : > { %v1328_v22 = vpop.f32.mrf.mxu0 }
 0x212   : > { %v3674_v12 = vpop.f32.mrf.mxu1  ;;  %v1284_v46 = vpop.f32.mrf.mxu3 }
 0x213   : > { %1425 = vmatmul.bf16.gmra.mxu2 %v3595_v29 }
 0x216   : > { %v1230_v53 = vpop.f32.mrf.mxu2 }
 0x217   : > { %v1280_v24 = vadd.f32 %v1279_v38, %v1230_v53 }
 0x218   : > { %v3688_v14 = vpop.f32.mrf.mxu0 }
 0x21a   : > { %v1372_v54 = vpop.f32.mrf.mxu1  ;;  %v1286_v35 = vpop.f32.mrf.mxu3 }
 0x21b   : > { %v3677_v59 = vadd.f32 %v1372_v54, %v1323_v47  ;;  %v1272_v54 = vadd.f32 %v1271_v23, %v1222_v37  ;;  %v3714_v37 = vld [vmem:[%s4173_s13] sm:$0xff] }
 0x21e   : > { %v1232_v58 = vpop.f32.mrf.mxu2 }
 0x21f   : > { %v1282_v15 = vadd.f32 %v1281_v43, %v1232_v58  ;;  %v1505_v58 = vpack.c.bf16 %v1272_v54, %v1270_v30 }
 0x221   : > { %v1507_v31 = vpack.c.bf16 %v1282_v15, %v1280_v24 }
 0x222   : > { %v3681_v62 = vpop.f32.mrf.mxu1  ;;  %v1445_v0 = vpop.f32.mrf.mxu3 }
 0x223   : > { %1430 = vmatmul.bf16.gmra.mxu2 %v3603_v40 }
 0x226   : > { %v1235_v3 = vpop.f32.mrf.mxu2 }
 0x227   : > { %v1285_v8 = vadd.f32 %v1284_v46, %v1235_v3  ;;  %v1333_v46 = vpop.f32.mrf.mxu0 }
 0x22a   : > { %v1377_v4 = vpop.f32.mrf.mxu1  ;;  %v3686_v29 = vpop.f32.mrf.mxu3 }
 0x22b   : > { %v3684_v44 = vadd.f32 %v1377_v4, %v1328_v22  ;;  %v1506_v22 = vpack.c.bf16 %v1277_v28, %v1275_v41 }
 0x22e   : > { %v1237_v6 = vpop.f32.mrf.mxu2 }
 0x22f   : > { %v1287_v9 = vadd.f32 %v1286_v35, %v1237_v6  ;;  %v3735_v6 = vld [vmem:[%s4173_s13 + $0x18] sm:$0xff] }
 0x230   : > { %4181 = vst [vmem:[#allocation3_spill] sm:$0xff] %v3735_v6 }
 0x231   : > { %v1508_v18 = vpack.c.bf16 %v1287_v9, %v1285_v8 }
 0x232   : > { %v3690_v20 = vpop.f32.mrf.mxu1  ;;  %v1450_v40 = vpop.f32.mrf.mxu3 }
 0x233   : > { %1557 = vmatpush.bf16.msra.mxu0 %v1508_v18  ;;  %v3741_v18 = vld [vmem:[%s4173_s13 + $0x20] sm:$0xff] }
 0x234   : > { %4182 = vst [vmem:[#allocation4_spill] sm:$0xff] %v3741_v18 }
 0x236   : > { %v1396_v36 = vpop.f32.mrf.mxu2 }
 0x237   : > { %v3692_v47 = vadd.f32 %v1445_v0, %v1396_v36  ;;  %1558 = vmatpush.bf16.msra.mxu0 %v1507_v31  ;;  %v3747_v36 = vld [vmem:[%s4173_s13 + $0x28] sm:$0xff] }
 0x238   : > { %4183 = vst [vmem:[#allocation5_spill] sm:$0xff] %v3747_v36 }
 0x23a   : > { %v1382_v35 = vpop.f32.mrf.mxu1  ;;  %v3696_v43 = vpop.f32.mrf.mxu3 }
 0x23b   : > { %v3694_v3 = vadd.f32 %v1382_v35, %v1333_v46  ;;  %1559 = vmatpush.bf16.msra.mxu0 %v1506_v22  ;;  %v3753_v35 = vld [vmem:[%s4173_s13 + $0x30] sm:$0xff] }
 0x23e   : > { %v3698_v38 = vpop.f32.mrf.mxu2 }
 0x23f   : > { %1560 = vmatpush.bf16.msra.mxu0 %v1505_v58 }
 0x242   : > { %v1455_v1 = vpop.f32.mrf.mxu3 }
 0x243   : > { %1561 = vmatpush.bf16.msra.mxu0 %v1504_v25 }
 0x246   : > { %v1401_v33 = vpop.f32.mrf.mxu2 }
 0x247   : > { %v3703_v39 = vadd.f32 %v1450_v40, %v1401_v33  ;;  %1562 = vmatpush.bf16.msra.mxu0 %v1503_v51 }
 0x24a   : > { %v1457_v23 = vpop.f32.mrf.mxu3 }
 0x24b   : > { %1563 = vmatpush.bf16.msra.mxu0 %v1502_v60 }
 0x24e   : > { %v1403_v30 = vpop.f32.mrf.mxu2 }
 0x24f   : > { %1564 = vmatpush.bf16.msra.mxu0 %v1501_v50 }
 0x252   : > { %1565 = vmatmul.bf16.vlgmr.msra.gmra.mxu0 %v3714_v37  ;;  %v1460_v16 = vpop.f32.mrf.mxu3 }
 0x256   : > { %v1406_v5 = vpop.f32.mrf.mxu2 }
 0x257   : > { %v1456_v11 = vadd.f32 %v1455_v1, %v1406_v5 }
 0x25a   : > { %v1462_v57 = vpop.f32.mrf.mxu3 }
 0x25e   : > { %v1408_v51 = vpop.f32.mrf.mxu2 }
 0x262   : > { %1570 = vmatmul.bf16.gmra.mxu0 %v3723_v56  ;;  %v1465_v25 = vpop.f32.mrf.mxu3 }
 0x266   : > { %v1411_v60 = vpop.f32.mrf.mxu2 }
 0x267   : > { %v1461_v61 = vadd.f32 %v1460_v16, %v1411_v60 }
 0x26a   : > { %v1467_v49 = vpop.f32.mrf.mxu3 }
 0x26e   : > { %v1413_v17 = vpop.f32.mrf.mxu2 }
 0x272   : > { %1575 = vmatmul.bf16.gmra.mxu0 %v3729_v48  ;;  %v1470_v0 = vpop.f32.mrf.mxu3 }
 0x276   : > { %v1416_v50 = vpop.f32.mrf.mxu2 }
 0x277   : > { %v1466_v53 = vadd.f32 %v1465_v25, %v1416_v50 }
 0x27a   : > { %v1472_v9 = vpop.f32.mrf.mxu3 }
 0x27e   : > { %v1418_v4 = vpop.f32.mrf.mxu2 }
 0x282   : > { %1580 = vmatmul.bf16.gmra.mxu0 %v3735_v6  ;;  %v1475_v24 = vpop.f32.mrf.mxu3  ;;  %v1463_v6 = vadd.f32 %v1462_v57, %v1413_v17 }
 0x286   : > { %v1421_v8 = vpop.f32.mrf.mxu2 }
 0x287   : > { %v1471_v50 = vadd.f32 %v1470_v0, %v1421_v8 }
 0x28a   : > { %v1477_v28 = vpop.f32.mrf.mxu3 }
 0x28e   : > { %v1423_v15 = vpop.f32.mrf.mxu2 }
 0x28f   : > { %v1473_v60 = vadd.f32 %v1472_v9, %v1423_v15  ;;  %v1453_v9 = vadd.f32 %v3696_v43, %v1403_v30  ;;  %v3776_v43 = vld [vmem:[%s4174_s14 + $0x8] sm:$0xff]  ;;  %v3821_v15 = vpop.f32.mrf.mxu0 }
 0x290   : > { %v2857_v30 = vld [vmem:[%s4169_s9 + $0xa8] sm:$0xf] }
 0x291   : > { %v1639_v57 = vpack.c.bf16 %v1453_v9, %v3703_v39  ;;  %v3800_v39 = vld [vmem:[%s4174_s14 + $0x28] sm:$0xff] }
 0x292   : > { %1585 = vmatmul.bf16.gmra.mxu0 %v3741_v18  ;;  %v1480_v41 = vpop.f32.mrf.mxu3  ;;  %v1643_v18 = vpack.c.bf16 %v1473_v60, %v1471_v50  ;;  %v2841_v50 = vld [vmem:[%s4169_s9 + $0x80] sm:$0xf] }
 0x296   : > { %v1426_v40 = vpop.f32.mrf.mxu2 }
 0x297   : > { %v1476_v5 = vadd.f32 %v1475_v24, %v1426_v40  ;;  %v2960_v24 = vld [vmem:[%s4169_s9 + $0x98] sm:$0xf0]  ;;  %v2959_v40 = vld [vmem:[%s4169_s9 + $0x94] sm:$0xf] }
 0x29a   : > { %v1482_v22 = vpop.f32.mrf.mxu3 }
 0x29e   : > { %v1428_v31 = vpop.f32.mrf.mxu2 }
 0x29f   : > { %v1478_v33 = vadd.f32 %v1477_v28, %v1428_v31  ;;  %v1458_v28 = vadd.f32 %v1457_v23, %v1408_v51  ;;  %v1641_v31 = vpack.c.bf16 %v1463_v6, %v1461_v61  ;;  %v3770_v23 = vld [vmem:[%s4174_s14] sm:$0xff]  ;;  %v2962_v51 = vld [vmem:[%s4169_s9 + $0xac] sm:$0xf] }
 0x2a1   : > { %v1644_v25 = vpack.c.bf16 %v1478_v33, %v1476_v5  ;;  %v1640_v0 = vpack.c.bf16 %v1458_v28, %v1456_v11  ;;  %v2963_v11 = vld [vmem:[%s4169_s9 + $0xb0] sm:$0xf0]  ;;  %v2833_v33 = vld [vmem:[%s4169_s9 + $0x78] sm:$0xf]  ;;  %v2956_v5 = vld [vmem:[%s4169_s9 + $0x7c] sm:$0xf] }
 0x2a2   : > { %1590 = vmatmul.bf16.gmra.mxu0 %v3747_v36  ;;  %v1468_v36 = vadd.f32 %v1467_v49, %v1418_v4  ;;  %v1448_v49 = vadd.f32 %v3686_v29, %v3698_v38  ;;  %v3782_v29 = vld [vmem:[%s4174_s14 + $0x10] sm:$0xff]  ;;  %v3794_v38 = vld [vmem:[%s4174_s14 + $0x20] sm:$0xff]  ;;  %v2858_v61 = vor.u32 %v2963_v11, %v2857_v30  ;;  %v2964_v4 = vld [vmem:[%s4169_s9 + $0xb8] sm:$0xf0] }
 0x2a3   : > { %v2958_v28 = vld [vmem:[%s4169_s9 + $0x88] sm:$0xf0]  ;;  %v2953_v30 = vld [vmem:[%s4169_s9 + $0x64] sm:$0xf] }
 0x2a4   : > { %v1642_v48 = vpack.c.bf16 %v1468_v36, %v1466_v53  ;;  %v1638_v17 = vpack.c.bf16 %v1448_v49, %v3692_v47  ;;  %v3788_v47 = vld [vmem:[%s4174_s14 + $0x18] sm:$0xff]  ;;  %v2865_v53 = vld [vmem:[%s4169_s9 + $0xb0] sm:$0xf]  ;;  %2003 = vmatpush.bf16.msra.mxu2 %v2858_v61  ;;  %v2842_v9 = vor.u32 %v2958_v28, %v2841_v50  ;;  %v2829_v61 = vld [vmem:[%s4169_s9 + $0x68] sm:$0xf] }
 0x2a5   : > { %v2866_v8 = vor.u32 %v2964_v4, %v2865_v53  ;;  %v3864_v49 = vld [vmem:[%s4174_s14 + $0x30] sm:$0xff]  ;;  %v2949_v28 = vld [vmem:[%s4169_s9 + $0x40] sm:$0xf0] }
 0x2a6   : > { %v1431_v54 = vpop.f32.mrf.mxu2 }
 0x2a7   : > { %v1481_v58 = vadd.f32 %v1480_v41, %v1431_v54  ;;  %v3759_v41 = vld [vmem:[%s4173_s13 + $0x38] sm:$0xff]  ;;  %2101 = vmatpush.bf16.msrb.mxu0 %v2866_v8  ;;  %v2847_v54 = vld [vmem:[%s4169_s9 + $0x9c] sm:$0xf0]  ;;  %v2951_v8 = vld [vmem:[%s4169_s9 + $0x50] sm:$0xf0] }
 0x2ae   : > { %v1433_v46 = vpop.f32.mrf.mxu2 }
 0x2af   : > { %v1483_v1 = vadd.f32 %v1482_v22, %v1433_v46  ;;  %v2853_v22 = vld [vmem:[%s4169_s9 + $0x98] sm:$0xf]  ;;  %v2961_v46 = vld [vmem:[%s4169_s9 + $0xa0] sm:$0xf0] }
 0x2b1   : > { %v1645_v16 = vpack.c.bf16 %v1483_v1, %v1481_v58  ;;  %v2850_v58 = vor.u32 %v2959_v40, %v2847_v54  ;;  %v2854_v1 = vor.u32 %v2961_v46, %v2853_v22  ;;  %v2811_v40 = vld [vmem:[%s4169_s9 + $0x54] sm:$0xf0]  ;;  %v2952_v54 = vld [vmem:[%s4169_s9 + $0x58] sm:$0xf0] }
 0x2b2   : > { %1595 = vmatmul.bf16.gmra.mxu0 %v3753_v35 }
 0x2b3   : > { %1694 = vmatpush.bf16.msrb.mxu1 %v1645_v16  ;;  %v2957_v16 = vld [vmem:[%s4169_s9 + $0x80] sm:$0xf0]  ;;  %2102 = vmatpush.bf16.msrb.mxu0 %v2854_v1  ;;  %v2948_v1 = vld [vmem:[%s4169_s9 + $0x38] sm:$0xf0] }
 0x2b4   : > { %v2834_v60 = vor.u32 %v2957_v16, %v2833_v33 }
 0x2b7   : > { %1695 = vmatpush.bf16.msrb.mxu1 %v1644_v25  ;;  %v2835_v25 = vld [vmem:[%s4169_s9 + $0x84] sm:$0xf0]  ;;  %2103 = vmatpush.bf16.msrb.mxu0 %v2842_v9  ;;  %v2785_v9 = vld [vmem:[%s4169_s9 + $0x18] sm:$0xf] }
 0x2bb   : > { %1696 = vmatpush.bf16.msrb.mxu1 %v1643_v18  ;;  %v2845_v18 = vld [vmem:[%s4169_s9 + $0x90] sm:$0xf] }
 0x2bc   : > { %v2846_v36 = vor.u32 %v2960_v24, %v2845_v18  ;;  %v2950_v18 = vld [vmem:[%s4169_s9 + $0x4c] sm:$0xf] }
 0x2bd   : > { %v2814_v22 = vor.u32 %v2950_v18, %v2811_v40  ;;  %v2941_v18 = vld [vmem:[%s4169_s9 + $0x4] sm:$0xf]  ;;  %v2775_v40 = vld [vmem:[%s4169_s9 + $0xc] sm:$0xf0] }
 0x2be   : > { %2004 = vmatpush.bf16.msra.mxu2 %v2846_v36  ;;  %v2817_v36 = vld [vmem:[%s4169_s9 + $0x50] sm:$0xf] }
 0x2bf   : > { %1697 = vmatpush.bf16.msrb.mxu1 %v1642_v48  ;;  %v2859_v48 = vld [vmem:[%s4169_s9 + $0xb4] sm:$0xf0]  ;;  %v2818_v46 = vor.u32 %v2952_v54, %v2817_v36  ;;  %v2781_v36 = vld [vmem:[%s4169_s9 + $0x8] sm:$0xf]  ;;  %v2943_v54 = vld [vmem:[%s4169_s9 + $0x10] sm:$0xf0] }
 0x2c0   : > { %v2862_v6 = vor.u32 %v2962_v51, %v2859_v48  ;;  %v2823_v51 = vld [vmem:[%s4169_s9 + $0x6c] sm:$0xf0]  ;;  %v2955_v48 = vld [vmem:[%s4169_s9 + $0x70] sm:$0xf0] }
 0x2c1   : > { %v2826_v53 = vor.u32 %v2953_v30, %v2823_v51  ;;  %v2830_v4 = vor.u32 %v2955_v48, %v2829_v61  ;;  %v2793_v51 = vld [vmem:[%s4169_s9 + $0x20] sm:$0xf]  ;;  %v2946_v61 = vld [vmem:[%s4169_s9 + $0x28] sm:$0xf0] }
 0x2c2   : > { %1600 = vmatmul.bf16.gmra.mxu0 %v3759_v41  ;;  %2052 = vmatpush.bf16.msrb.mxu3 %v2862_v6  ;;  %v2809_v6 = vld [vmem:[%s4169_s9 + $0x48] sm:$0xf] }
 0x2c3   : > { %1698 = vmatpush.bf16.msrb.mxu1 %v1641_v31  ;;  %v2838_v31 = vor.u32 %v2956_v5, %v2835_v25  ;;  %2005 = vmatpush.bf16.msra.mxu2 %v2834_v60  ;;  %v2810_v24 = vor.u32 %v2951_v8, %v2809_v6  ;;  %v2947_v5 = vld [vmem:[%s4169_s9 + $0x34] sm:$0xf]  ;;  %v2799_v60 = vld [vmem:[%s4169_s9 + $0x3c] sm:$0xf0]  ;;  %v2805_v25 = vld [vmem:[%s4169_s9 + $0x38] sm:$0xf] }
 0x2c4   : > { %2104 = vmatpush.bf16.msrb.mxu0 %v2830_v4  ;;  %v2802_v50 = vor.u32 %v2947_v5, %v2799_v60  ;;  %v3942_v4 = vld [vmem:[%s4174_s14 + $0x38] sm:$0xff]  ;;  %v2773_v6 = vld [vmem:[%s4169_s9] sm:$0xf]  ;;  %v2942_v8 = vld [vmem:[%s4169_s9 + $0x8] sm:$0xf0] }
 0x2c6   : > { %2053 = vmatpush.bf16.msrb.mxu3 %v2850_v58  ;;  %v2797_v58 = vld [vmem:[%s4169_s9 + $0x30] sm:$0xf] }
 0x2c7   : > { %1699 = vmatpush.bf16.msrb.mxu1 %v1640_v0  ;;  %v2798_v16 = vor.u32 %v2948_v1, %v2797_v58  ;;  %v3963_v1 = vpop.f32.mrf.mxu1 }
 0x2c8   : > { %2105 = vmatpush.bf16.msrb.mxu0 %v2818_v46  ;;  %v2782_v46 = vor.u32 %v2943_v54, %v2781_v36 }
 0x2ca   : > { %2054 = vmatpush.bf16.msrb.mxu3 %v2838_v31  ;;  %v2806_v31 = vor.u32 %v2949_v28, %v2805_v25  ;;  %v1350_v28 = vadd.f32 %v3632_v45, %v3616_v52  ;;  %v3985_v52 = vld [vmem:[%s4168_s8] ss:$0 sm:$0xff] }
 0x2cb   : > { %1700 = vmatpush.bf16.msrb.mxu1 %v1639_v57  ;;  %v2821_v57 = vld [vmem:[%s4169_s9 + $0x60] sm:$0xf] }
 0x2cc   : > { %2106 = vmatpush.bf16.msrb.mxu0 %v2806_v31 }
 0x2ce   : > { %2055 = vmatpush.bf16.msrb.mxu3 %v2826_v53  ;;  %v2794_v53 = vor.u32 %v2946_v61, %v2793_v51 }
 0x2cf   : > { %1701 = vmatpush.bf16.msrb.mxu1 %v1638_v17  ;;  %v3859_v0 = vpop.f32.mrf.mxu0  ;;  %v2954_v17 = vld [vmem:[%s4169_s9 + $0x68] sm:$0xf0] }
 0x2d0   : > { %v2822_v11 = vor.u32 %v2954_v17, %v2821_v57  ;;  %v2945_v57 = vld [vmem:[%s4169_s9 + $0x20] sm:$0xf0]  ;;  %v2944_v17 = vld [vmem:[%s4169_s9 + $0x1c] sm:$0xf]  ;;  %2107 = vmatpush.bf16.msrb.mxu0 %v2794_v53  ;;  %v1606_v5 = vadd.f32 %v3859_v0, %v3627_v63  ;;  %v3978_v63 = vld [vmem:[%s4167_s7] ss:$0 sm:$0xff] }
 0x2d1   : > { %v2786_v30 = vor.u32 %v2945_v57, %v2785_v9 }
 0x2d2   : > { %1702 = vmatmul.bf16.vlgmr.msrb.gmra.mxu1 %v3770_v23  ;;  %2006 = vmatpush.bf16.msra.mxu2 %v2822_v11  ;;  %v2787_v11 = vld [vmem:[%s4169_s9 + $0x24] sm:$0xf0] }
 0x2d3   : > { %2056 = vmatpush.bf16.msrb.mxu3 %v2814_v22  ;;  %v2790_v48 = vor.u32 %v2944_v17, %v2787_v11  ;;  %v2778_v22 = vor.u32 %v2941_v18, %v2775_v40  ;;  %v1355_v40 = vadd.f32 %v3646_v55, %v3629_v2 }
 0x2d4   : > { %2108 = vmatpush.bf16.msrb.mxu0 %v2782_v46 }
 0x2d6   : > { %2007 = vmatpush.bf16.msra.mxu2 %v2810_v24  ;;  %v2774_v24 = vor.u32 %v2942_v8, %v2773_v6 }
 0x2d7   : > { %v1568_v33 = vpop.f32.mrf.mxu0  ;;  %2057 = vmatpush.bf16.msrb.mxu3 %v2802_v50  ;;  %v3970_v50 = vld [vmem:[%s4166_s6] ss:$0 sm:$0xff] }
 0x2d8   : > { %v1607_v57 = vadd.f32 %v1568_v33, %v1350_v28 }
 0x2da   : > { %2008 = vmatpush.bf16.msra.mxu2 %v2798_v16 }
 0x2db   : > { %2058 = vmatpush.bf16.msrb.mxu3 %v2790_v48 }
 0x2de   : > { %2009 = vmatpush.bf16.msra.mxu2 %v2786_v30 }
 0x2df   : > { %v1571_v58 = vpop.f32.mrf.mxu0  ;;  %2059 = vmatpush.bf16.msrb.mxu3 %v2778_v22 }
 0x2e0   : > { %v1608_v33 = vadd.f32 %v1571_v58, %v3637_v7 }
 0x2e2   : > { %1707 = vmatmul.bf16.gmra.mxu1 %v3776_v43  ;;  %2010 = vmatpush.bf16.msra.mxu2 %v2774_v24 }
 0x2e7   : > { %v1573_v16 = vpop.f32.mrf.mxu0 }
 0x2e8   : > { %v1609_v54 = vadd.f32 %v1573_v16, %v1355_v40 }
 0x2ef   : > { %v1576_v9 = vpop.f32.mrf.mxu0 }
 0x2f0   : > { %v1610_v28 = vadd.f32 %v1576_v9, %v3651_v21 }
 0x2f2   : > { %1712 = vmatmul.bf16.gmra.mxu1 %v3782_v29 }
 0x2f7   : > { %v1578_v48 = vpop.f32.mrf.mxu0 }
 0x2ff   : > { %v1581_v58 = vpop.f32.mrf.mxu0 }
 0x302   : > { %1717 = vmatmul.bf16.gmra.mxu1 %v3788_v47 }
 0x312   : > { %1722 = vmatmul.bf16.gmra.mxu1 %v3794_v38 }
 0x322   : > { %1727 = vmatmul.bf16.gmra.mxu1 %v3800_v39 }
 0x332   : > { %1732 = vmatmul.bf16.gmra.mxu1 %v3864_v49 }
 0x342   : > { %1737 = vmatmul.bf16.gmra.mxu1 %v3942_v4 }
 0x34f   : > { %v1703_v60 = vpop.f32.mrf.mxu1 }
 0x350   : > { %v1743_v25 = vadd.f32 %v1703_v60, %v1606_v5 }
 0x352   : > { %v1763_v31 = vadd.f32 %v3970_v50, %v1743_v25 }
 0x354   : > { %v1779_v30 = vmax.f32 %v1763_v31, 0.0 }
 0x356   : > { %v1799_v51 = vmul.f32 %v3978_v63, %v1779_v30  ;;  %v1583_v30 = vpop.f32.mrf.mxu0 }
 0x357   : > { %v1705_v17 = vpop.f32.mrf.mxu1 }
 0x358   : > { %v1744_v0 = vadd.f32 %v1705_v17, %v1607_v57  ;;  %v1819_v6 = vadd.f32 %v3985_v52, %v1799_v51 }
 0x35a   : > { %v1764_v11 = vadd.f32 %v3970_v50, %v1744_v0  ;;  %v1360_v0 = vadd.f32 %v3658_v26, %v3642_v13 }
 0x35c   : > { %v1780_v45 = vmax.f32 %v1764_v11, 0.0  ;;  %v1611_v51 = vadd.f32 %v1578_v48, %v1360_v0 }
 0x35e   : > { %v1800_v61 = vmul.f32 %v3978_v63, %v1780_v45 }
 0x35f   : > { %v1708_v53 = vpop.f32.mrf.mxu1 }
 0x360   : > { %v1820_v8 = vadd.f32 %v3985_v52, %v1800_v61  ;;  %v1745_v18 = vadd.f32 %v1708_v53, %v1608_v33 }
 0x362   : > { %v1835_v24 = vpack.c.bf16 %v1820_v8, %v1819_v6  ;;  %v1765_v36 = vadd.f32 %v3970_v50, %v1745_v18  ;;  %v1586_v6 = vpop.f32.mrf.mxu0  ;;  %v1612_v8 = vadd.f32 %v1581_v58, %v3663_v32 }
 0x364   : > { %2011 = vmatmul.bf16.vlgmr.msra.gmra.mxu2 %v1835_v24  ;;  %2060 = vmatmul.bf16.vlgmr.msrb.gmra.mxu3 %v1835_v24  ;;  %v1781_v22 = vmax.f32 %v1765_v36, 0.0  ;;  %v1365_v36 = vadd.f32 %v3666_v10, %v3661_v27 }
 0x365   : > { %2109 = vmatmul.bf16.vlgmr.msrb.gmra.mxu0 %v1835_v24 }
 0x366   : > { %v1801_v60 = vmul.f32 %v3978_v63, %v1781_v22 }
 0x367   : > { %v1710_v7 = vpop.f32.mrf.mxu1 }
 0x368   : > { %v1746_v46 = vadd.f32 %v1710_v7, %v1609_v54  ;;  %v1821_v57 = vadd.f32 %v3985_v52, %v1801_v60  ;;  %v1613_v7 = vadd.f32 %v1583_v30, %v1365_v36 }
 0x36a   : > { %v1766_v5 = vadd.f32 %v3970_v50, %v1746_v46  ;;  %v1588_v22 = vpop.f32.mrf.mxu0 }
 0x36c   : > { %v1782_v25 = vmax.f32 %v1766_v5, 0.0 }
 0x36e   : > { %v1802_v31 = vmul.f32 %v3978_v63, %v1782_v25 }
 0x36f   : > { %v1713_v2 = vpop.f32.mrf.mxu1 }
 0x370   : > { %v1747_v55 = vadd.f32 %v1713_v2, %v1610_v28  ;;  %v1822_v17 = vadd.f32 %v3985_v52, %v1802_v31  ;;  %v1614_v28 = vadd.f32 %v1586_v6, %v3671_v42 }
 0x372   : > { %v1836_v16 = vpack.c.bf16 %v1822_v17, %v1821_v57  ;;  %v1767_v11 = vadd.f32 %v3970_v50, %v1747_v55  ;;  %v1591_v57 = vpop.f32.mrf.mxu0 }
 0x374   : > { %2016 = vmatmul.bf16.gmra.mxu2 %v1836_v16  ;;  %2065 = vmatmul.bf16.gmra.mxu3 %v1836_v16  ;;  %v1783_v9 = vmax.f32 %v1767_v11, 0.0 }
 0x375   : > { %2114 = vmatmul.bf16.gmra.mxu0 %v1836_v16  ;;  %v1370_v16 = vadd.f32 %v3674_v12, %v3669_v19 }
 0x376   : > { %v1803_v61 = vmul.f32 %v3978_v63, %v1783_v9 }
 0x377   : > { %v1715_v21 = vpop.f32.mrf.mxu1  ;;  %v1615_v0 = vadd.f32 %v1588_v22, %v1370_v16 }
 0x378   : > { %v1748_v45 = vadd.f32 %v1715_v21, %v1611_v51  ;;  %v1823_v24 = vadd.f32 %v3985_v52, %v1803_v61  ;;  %v1616_v61 = vadd.f32 %v1591_v57, %v3677_v59 }
 0x37a   : > { %v1768_v33 = vadd.f32 %v3970_v50, %v1748_v45  ;;  %v1593_v9 = vpop.f32.mrf.mxu0 }
 0x37c   : > { %v1784_v53 = vmax.f32 %v1768_v33, 0.0 }
 0x37e   : > { %v1804_v18 = vmul.f32 %v3978_v63, %v1784_v53 }
 0x37f   : > { %v1718_v13 = vpop.f32.mrf.mxu1 }
 0x380   : > { %v1749_v26 = vadd.f32 %v1718_v13, %v1612_v8  ;;  %v1824_v40 = vadd.f32 %v3985_v52, %v1804_v18  ;;  %v1375_v13 = vadd.f32 %v3681_v62, %v3679_v34 }
 0x382   : > { %v1837_v48 = vpack.c.bf16 %v1824_v40, %v1823_v24  ;;  %v1769_v54 = vadd.f32 %v3970_v50, %v1749_v26  ;;  %v1596_v24 = vpop.f32.mrf.mxu0  ;;  %v1617_v40 = vadd.f32 %v1593_v9, %v1375_v13  ;;  %v1385_v9 = vadd.f32 %v3963_v1, %v3821_v15 }
 0x384   : > { %2021 = vmatmul.bf16.gmra.mxu2 %v1837_v48  ;;  %2070 = vmatmul.bf16.gmra.mxu3 %v1837_v48  ;;  %v1785_v46 = vmax.f32 %v1769_v54, 0.0 }
 0x385   : > { %2119 = vmatmul.bf16.gmra.mxu0 %v1837_v48 }
 0x386   : > { %v1805_v60 = vmul.f32 %v3978_v63, %v1785_v46 }
 0x387   : > { %v1720_v32 = vpop.f32.mrf.mxu1 }
 0x388   : > { %v1750_v58 = vadd.f32 %v1720_v32, %v1613_v7  ;;  %v1825_v2 = vadd.f32 %v3985_v52, %v1805_v60  ;;  %v1618_v32 = vadd.f32 %v1596_v24, %v3684_v44 }
 0x38a   : > { %v1770_v5 = vadd.f32 %v3970_v50, %v1750_v58  ;;  %v1598_v34 = vpop.f32.mrf.mxu0 }
 0x38c   : > { %v1786_v25 = vmax.f32 %v1770_v5, 0.0 }
 0x38e   : > { %v1806_v31 = vmul.f32 %v3978_v63, %v1786_v25 }
 0x38f   : > { %v1723_v27 = vpop.f32.mrf.mxu1 }
 0x390   : > { %v1751_v10 = vadd.f32 %v1723_v27, %v1614_v28  ;;  %v1826_v55 = vadd.f32 %v3985_v52, %v1806_v31  ;;  %v1380_v28 = vadd.f32 %v3690_v20, %v3688_v14 }
 0x392   : > { %v1838_v17 = vpack.c.bf16 %v1826_v55, %v1825_v2  ;;  %v1771_v30 = vadd.f32 %v3970_v50, %v1751_v10  ;;  %v1619_v27 = vadd.f32 %v1598_v34, %v1380_v28  ;;  %v1601_v55 = vpop.f32.mrf.mxu0 }
 0x394   : > { %2026 = vmatmul.bf16.gmra.mxu2 %v1838_v17  ;;  %2075 = vmatmul.bf16.gmra.mxu3 %v1838_v17  ;;  %v1787_v11 = vmax.f32 %v1771_v30, 0.0  ;;  %v1620_v30 = vadd.f32 %v1601_v55, %v3694_v3 }
 0x395   : > { %2124 = vmatmul.bf16.gmra.mxu0 %v1838_v17 }
 0x396   : > { %v1807_v45 = vmul.f32 %v3978_v63, %v1787_v11 }
 0x397   : > { %v1725_v42 = vpop.f32.mrf.mxu1 }
 0x398   : > { %v1752_v51 = vadd.f32 %v1725_v42, %v1615_v0  ;;  %v1827_v6 = vadd.f32 %v3985_v52, %v1807_v45 }
 0x39a   : > { %v1772_v21 = vadd.f32 %v3970_v50, %v1752_v51 }
 0x39c   : > { %v1788_v33 = vmax.f32 %v1772_v21, 0.0  ;;  %v1603_v21 = vpop.f32.mrf.mxu0 }
 0x39e   : > { %v1808_v53 = vmul.f32 %v3978_v63, %v1788_v33  ;;  %v1621_v33 = vadd.f32 %v1603_v21, %v1385_v9 }
 0x39f   : > { %v1728_v19 = vpop.f32.mrf.mxu1 }
 0x3a0   : > { %v1753_v12 = vadd.f32 %v1728_v19, %v1616_v61  ;;  %v1828_v8 = vadd.f32 %v3985_v52, %v1808_v53 }
 0x3a2   : > { %v1839_v18 = vpack.c.bf16 %v1828_v8, %v1827_v6  ;;  %v1773_v26 = vadd.f32 %v3970_v50, %v1753_v12 }
 0x3a4   : > { %2031 = vmatmul.bf16.gmra.mxu2 %v1839_v18  ;;  %2080 = vmatmul.bf16.gmra.mxu3 %v1839_v18  ;;  %v1789_v48 = vmax.f32 %v1773_v26, 0.0 }
 0x3a5   : > { %2129 = vmatmul.bf16.gmra.mxu0 %v1839_v18 }
 0x3a6   : > { %v1809_v7 = vmul.f32 %v3978_v63, %v1789_v48 }
 0x3a7   : > { %v1730_v59 = vpop.f32.mrf.mxu1 }
 0x3a8   : > { %v1754_v36 = vadd.f32 %v1730_v59, %v1617_v40  ;;  %v1829_v5 = vadd.f32 %v3985_v52, %v1809_v7 }
 0x3aa   : > { %v1774_v54 = vadd.f32 %v3970_v50, %v1754_v36 }
 0x3ac   : > { %v1790_v22 = vmax.f32 %v1774_v54, 0.0 }
 0x3ae   : > { %v1810_v46 = vmul.f32 %v3978_v63, %v1790_v22 }
 0x3af   : > { %v1733_v62 = vpop.f32.mrf.mxu1 }
 0x3b0   : > { %v1755_v58 = vadd.f32 %v1733_v62, %v1618_v32  ;;  %v1830_v60 = vadd.f32 %v3985_v52, %v1810_v46 }
 0x3b2   : > { %v1840_v25 = vpack.c.bf16 %v1830_v60, %v1829_v5  ;;  %v1775_v31 = vadd.f32 %v3970_v50, %v1755_v58 }
 0x3b4   : > { %2036 = vmatmul.bf16.gmra.mxu2 %v1840_v25  ;;  %2085 = vmatmul.bf16.gmra.mxu3 %v1840_v25  ;;  %v1791_v10 = vmax.f32 %v1775_v31, 0.0 }
 0x3b5   : > { %2134 = vmatmul.bf16.gmra.mxu0 %v1840_v25 }
 0x3b6   : > { %v1811_v17 = vmul.f32 %v3978_v63, %v1791_v10 }
 0x3b7   : > { %v1735_v44 = vpop.f32.mrf.mxu1 }
 0x3b8   : > { %v1756_v2 = vadd.f32 %v1735_v44, %v1619_v27  ;;  %v1831_v42 = vadd.f32 %v3985_v52, %v1811_v17 }
 0x3ba   : > { %v1776_v57 = vadd.f32 %v3970_v50, %v1756_v2 }
 0x3bc   : > { %v1792_v16 = vmax.f32 %v1776_v57, 0.0 }
 0x3be   : > { %v1812_v0 = vmul.f32 %v3978_v63, %v1792_v16 }
 0x3bf   : > { %v1738_v14 = vpop.f32.mrf.mxu1 }
 0x3c0   : > { %v1757_v20 = vadd.f32 %v1738_v14, %v1620_v30  ;;  %v1832_v11 = vadd.f32 %v3985_v52, %v1812_v0 }
 0x3c2   : > { %v1841_v51 = vpack.c.bf16 %v1832_v11, %v1831_v42  ;;  %v1777_v45 = vadd.f32 %v3970_v50, %v1757_v20 }
 0x3c4   : > { %2041 = vmatmul.bf16.gmra.mxu2 %v1841_v51  ;;  %2090 = vmatmul.bf16.gmra.mxu3 %v1841_v51  ;;  %v1793_v61 = vmax.f32 %v1777_v45, 0.0 }
 0x3c5   : > { %2139 = vmatmul.bf16.gmra.mxu0 %v1841_v51 }
 0x3c6   : > { %v1813_v12 = vmul.f32 %v3978_v63, %v1793_v61 }
 0x3c7   : > { %v1740_v3 = vpop.f32.mrf.mxu1 }
 0x3c8   : > { %v1758_v53 = vadd.f32 %v1740_v3, %v1621_v33  ;;  %v1833_v18 = vadd.f32 %v3985_v52, %v1813_v12 }
 0x3ca   : > { %v1778_v19 = vadd.f32 %v3970_v50, %v1758_v53 }
 0x3cc   : > { %v1794_v6 = vmax.f32 %v1778_v19, 0.0 }
 0x3ce   : > { %v1814_v8 = vmul.f32 %v3978_v63, %v1794_v6 }
 0x3d0   : > { %v1834_v15 = vadd.f32 %v3985_v52, %v1814_v8  ;;  %v4184_v8 = vld [vmem:[#allocation2_spill] sm:$0xff] }
 0x3d2   : > { %v1842_v1 = vpack.c.bf16 %v1834_v15, %v1833_v18  ;;  %v4185_v18 = vld [vmem:[#allocation3_spill] sm:$0xff]  ;;  %v4186_v15 = vld [vmem:[#allocation4_spill] sm:$0xff] }
 0x3d4   : > { %2046 = vmatmul.bf16.gmra.mxu2 %v1842_v1  ;;  %2095 = vmatmul.bf16.gmra.mxu3 %v1842_v1 }
 0x3d5   : > { %2144 = vmatmul.bf16.gmra.mxu0 %v1842_v1 }
 0x3e2   : > { %v2110_v13 = vpop.f32.mrf.mxu0 }
 0x3e7   : > { %v4053_v26 = vpop.f32.mrf.mxu2 }
 0x3ea   : > { %v2112_v24 = vpop.f32.mrf.mxu0 }
 0x3eb   : > { %v2223_v40 = vpack.c.bf16 %v2112_v24, %v2110_v13 }
 0x3ef   : > { %v2014_v59 = vpop.f32.mrf.mxu2 }
 0x3f0   : > { %v2150_v6 = vpack.c.bf16 %v2014_v59, %v4053_v26 }
 0x3f2   : > { %v2115_v50 = vpop.f32.mrf.mxu0 }
 0x3f7   : > { %v2017_v48 = vpop.f32.mrf.mxu2 }
 0x3fa   : > { %v2117_v36 = vpop.f32.mrf.mxu0 }
 0x3fb   : > { %v2224_v54 = vpack.c.bf16 %v2117_v36, %v2115_v50 }
 0x3ff   : > { %v2019_v7 = vpop.f32.mrf.mxu2 }
 0x400   : > { %v2151_v12 = vpack.c.bf16 %v2019_v7, %v2017_v48 }
 0x402   : > { %v2120_v63 = vpop.f32.mrf.mxu0 }
 0x407   : > { %v2022_v22 = vpop.f32.mrf.mxu2 }
 0x40a   : > { %v2122_v32 = vpop.f32.mrf.mxu0 }
 0x40b   : > { %v2225_v46 = vpack.c.bf16 %v2122_v32, %v2120_v63 }
 0x40f   : > { %v2024_v52 = vpop.f32.mrf.mxu2 }
 0x410   : > { %v2152_v19 = vpack.c.bf16 %v2024_v52, %v2022_v22 }
 0x412   : > { %v2125_v34 = vpop.f32.mrf.mxu0 }
 0x417   : > { %v2027_v62 = vpop.f32.mrf.mxu2 }
 0x41a   : > { %v2127_v58 = vpop.f32.mrf.mxu0 }
 0x41b   : > { %v2226_v5 = vpack.c.bf16 %v2127_v58, %v2125_v34 }
 0x41f   : > { %v2029_v60 = vpop.f32.mrf.mxu2 }
 0x420   : > { %v2153_v53 = vpack.c.bf16 %v2029_v60, %v2027_v62 }
 0x422   : > { %v2130_v25 = vpop.f32.mrf.mxu0 }
 0x427   : > { %v2032_v28 = vpop.f32.mrf.mxu2 }
 0x42a   : > { %v2132_v31 = vpop.f32.mrf.mxu0 }
 0x42b   : > { %v2227_v33 = vpack.c.bf16 %v2132_v31, %v2130_v25 }
 0x42f   : > { %v2034_v27 = vpop.f32.mrf.mxu2 }
 0x430   : > { %v2154_v61 = vpack.c.bf16 %v2034_v27, %v2032_v28 }
 0x432   : > { %v2135_v44 = vpop.f32.mrf.mxu0 }
 0x437   : > { %v2037_v10 = vpop.f32.mrf.mxu2 }
 0x43a   : > { %v2137_v2 = vpop.f32.mrf.mxu0 }
 0x43b   : > { %v2228_v9 = vpack.c.bf16 %v2137_v2, %v2135_v44 }
 0x43f   : > { %v2039_v55 = vpop.f32.mrf.mxu2 }
 0x440   : > { %v2155_v3 = vpack.c.bf16 %v2039_v55, %v2037_v10 }
 0x442   : > { %v2140_v57 = vpop.f32.mrf.mxu0 }
 0x447   : > { %v2042_v17 = vpop.f32.mrf.mxu2 }
 0x44a   : > { %v2142_v16 = vpop.f32.mrf.mxu0 }
 0x44b   : > { %v2229_v11 = vpack.c.bf16 %v2142_v16, %v2140_v57 }
 0x44f   : > { %v2044_v30 = vpop.f32.mrf.mxu2 }
 0x450   : > { %v2156_v45 = vpack.c.bf16 %v2044_v30, %v2042_v17 }
 0x452   : > { %v2145_v0 = vpop.f32.mrf.mxu0 }
 0x457   : > { %v2047_v14 = vpop.f32.mrf.mxu2 }
 0x45a   : > { %v2147_v20 = vpop.f32.mrf.mxu0 }
 0x45b   : > { %v2230_v42 = vpack.c.bf16 %v2147_v20, %v2145_v0 }
 0x45d   : > { %2231 = vmatpush.bf16.msrb.mxu2 %v2230_v42 }
 0x45f   : > { %v2049_v51 = vpop.f32.mrf.mxu2 }
 0x460   : > { %v2157_v21 = vpack.c.bf16 %v2049_v51, %v2047_v14 }
 0x461   : > { %2232 = vmatpush.bf16.msrb.mxu2 %v2229_v11 }
 0x462   : > { %2158 = vmatpush.bf16.msra.mxu1 %v2157_v21 }
 0x465   : > { %2233 = vmatpush.bf16.msrb.mxu2 %v2228_v9 }
 0x466   : > { %2159 = vmatpush.bf16.msra.mxu1 %v2156_v45 }
 0x469   : > { %2234 = vmatpush.bf16.msrb.mxu2 %v2227_v33 }
 0x46a   : > { %2160 = vmatpush.bf16.msra.mxu1 %v2155_v3 }
 0x46d   : > { %2235 = vmatpush.bf16.msrb.mxu2 %v2226_v5 }
 0x46e   : > { %2161 = vmatpush.bf16.msra.mxu1 %v2154_v61 }
 0x471   : > { %2236 = vmatpush.bf16.msrb.mxu2 %v2225_v46 }
 0x472   : > { %2162 = vmatpush.bf16.msra.mxu1 %v2153_v53 }
 0x475   : > { %2237 = vmatpush.bf16.msrb.mxu2 %v2224_v54 }
 0x476   : > { %2163 = vmatpush.bf16.msra.mxu1 %v2152_v19 }
 0x479   : > { %2238 = vmatpush.bf16.msrb.mxu2 %v2223_v40 }
 0x47a   : > { %2164 = vmatpush.bf16.msra.mxu1 %v2151_v12 }
 0x47c   : > { %2239 = vmatmul.bf16.vlgmr.msrb.gmra.mxu2 %v3770_v23  ;;  %v4187_v23 = vld [vmem:[#allocation5_spill] sm:$0xff] }
 0x47e   : > { %2165 = vmatpush.bf16.msra.mxu1 %v2150_v6 }
 0x481   : > { %2166 = vmatmul.bf16.vlgmr.msra.gmra.mxu1 %v3714_v37  ;;  %v2061_v37 = vpop.f32.mrf.mxu3 }
 0x48c   : > { %2244 = vmatmul.bf16.gmra.mxu2 %v3776_v43 }
 0x491   : > { %2171 = vmatmul.bf16.gmra.mxu1 %v3723_v56  ;;  %v2063_v56 = vpop.f32.mrf.mxu3 }
 0x499   : > { %v2066_v43 = vpop.f32.mrf.mxu3 }
 0x49c   : > { %2249 = vmatmul.bf16.gmra.mxu2 %v3782_v29 }
 0x4a1   : > { %2176 = vmatmul.bf16.gmra.mxu1 %v4184_v8  ;;  %v2068_v29 = vpop.f32.mrf.mxu3 }
 0x4a9   : > { %v2071_v50 = vpop.f32.mrf.mxu3 }
 0x4ac   : > { %2254 = vmatmul.bf16.gmra.mxu2 %v3788_v47 }
 0x4b1   : > { %2181 = vmatmul.bf16.gmra.mxu1 %v4185_v18  ;;  %v2073_v62 = vpop.f32.mrf.mxu3 }
 0x4b9   : > { %v2076_v2 = vpop.f32.mrf.mxu3 }
 0x4bc   : > { %2259 = vmatmul.bf16.gmra.mxu2 %v3794_v38 }
 0x4c1   : > { %2186 = vmatmul.bf16.gmra.mxu1 %v4186_v15  ;;  %v2078_v11 = vpop.f32.mrf.mxu3 }
 0x4c9   : > { %v2081_v18 = vpop.f32.mrf.mxu3 }
 0x4cc   : > { %2264 = vmatmul.bf16.gmra.mxu2 %v3800_v39  ;;  %v4075_v39 = vld [vmem:[%s4170_s10] ss:$0 sm:$0xff] }
 0x4d1   : > { %2191 = vmatmul.bf16.gmra.mxu1 %v4187_v23 }
 0x4dc   : > { %2269 = vmatmul.bf16.gmra.mxu2 %v3864_v49 }
 0x4e1   : > { %2196 = vmatmul.bf16.gmra.mxu1 %v3753_v35  ;;  %v4081_v35 = vld [vmem:[%s4171_s11] ss:$0 sm:$0xff] }
 0x4ec   : > { %2274 = vmatmul.bf16.gmra.mxu2 %v3942_v4  ;;  %v4087_v4 = vld [vmem:[%s4172_s12] ss:$0 sm:$0xff] }
 0x4f1   : > { %2201 = vmatmul.bf16.gmra.mxu1 %v3759_v41 }
 0x4fe   : > { %v2167_v47 = vpop.f32.mrf.mxu1 }
 0x4ff   : > { %v2207_v38 = vadd.f32 %v2167_v47, %v2061_v37  ;;  %v2240_v1 = vpop.f32.mrf.mxu2 }
 0x501   : > { %v2280_v13 = vadd.f32 %v2240_v1, %v2207_v38 }
 0x503   : > { %v2300_v49 = vadd.f32 %v4075_v39, %v2280_v13 }
 0x505   : > { %v2316_v41 = vmax.f32 %v2300_v49, 0.0  ;;  %v2083_v49 = vpop.f32.mrf.mxu3 }
 0x506   : > { %v2169_v26 = vpop.f32.mrf.mxu1 }
 0x507   : > { %v2336_v24 = vmul.f32 %v4081_v35, %v2316_v41  ;;  %v2208_v40 = vadd.f32 %v2169_v26, %v2063_v56  ;;  %v2242_v59 = vpop.f32.mrf.mxu2 }
 0x509   : > { %v2356_v48 = vadd.f32 %v4087_v4, %v2336_v24  ;;  %v2281_v36 = vadd.f32 %v2242_v59, %v2208_v40 }
 0x50b   : > { %2372 = vst [vmem:[%s4093_s19] sm:$0xff] %v2356_v48  ;;  %v2301_v54 = vadd.f32 %v4075_v39, %v2281_v36 }
 0x50d   : > { %v2317_v7 = vmax.f32 %v2301_v54, 0.0 }
 0x50e   : > { %v2172_v63 = vpop.f32.mrf.mxu1 }
 0x50f   : > { %v2337_v22 = vmul.f32 %v4081_v35, %v2317_v7  ;;  %v2209_v32 = vadd.f32 %v2172_v63, %v2066_v43  ;;  %v2245_v46 = vpop.f32.mrf.mxu2  ;;  %v2086_v7 = vpop.f32.mrf.mxu3 }
 0x511   : > { %v2357_v52 = vadd.f32 %v4087_v4, %v2337_v22  ;;  %v2282_v34 = vadd.f32 %v2245_v46, %v2209_v32 }
 0x513   : > { %2373 = vst [vmem:[%s4093_s19 + $0x8] sm:$0xff] %v2357_v52  ;;  %v2302_v58 = vadd.f32 %v4075_v39, %v2282_v34 }
 0x515   : > { %v2318_v5 = vmax.f32 %v2302_v58, 0.0 }
 0x516   : > { %v2174_v60 = vpop.f32.mrf.mxu1 }
 0x517   : > { %v2338_v25 = vmul.f32 %v4081_v35, %v2318_v5  ;;  %v2210_v28 = vadd.f32 %v2174_v60, %v2068_v29  ;;  %v2247_v31 = vpop.f32.mrf.mxu2  ;;  %v2088_v60 = vpop.f32.mrf.mxu3 }
 0x519   : > { %v2358_v27 = vadd.f32 %v4087_v4, %v2338_v25  ;;  %v2283_v44 = vadd.f32 %v2247_v31, %v2210_v28 }
 0x51b   : > { %2374 = vst [vmem:[%s4093_s19 + $0x10] sm:$0xff] %v2358_v27  ;;  %v2303_v10 = vadd.f32 %v4075_v39, %v2283_v44 }
 0x51d   : > { %v2319_v55 = vmax.f32 %v2303_v10, 0.0 }
 0x51e   : > { %v2177_v57 = vpop.f32.mrf.mxu1 }
 0x51f   : > { %v2339_v17 = vmul.f32 %v4081_v35, %v2319_v55  ;;  %v2211_v16 = vadd.f32 %v2177_v57, %v2071_v50  ;;  %v2250_v30 = vpop.f32.mrf.mxu2 }
 0x521   : > { %v2359_v0 = vadd.f32 %v4087_v4, %v2339_v17  ;;  %v2284_v14 = vadd.f32 %v2250_v30, %v2211_v16 }
 0x523   : > { %2375 = vst [vmem:[%s4093_s19 + $0x18] sm:$0xff] %v2359_v0  ;;  %v2304_v20 = vadd.f32 %v4075_v39, %v2284_v14  ;;  %v2091_v0 = vpop.f32.mrf.mxu3 }
 0x525   : > { %v2320_v42 = vmax.f32 %v2304_v20, 0.0 }
 0x526   : > { %v2179_v51 = vpop.f32.mrf.mxu1 }
 0x527   : > { %v2340_v21 = vmul.f32 %v4081_v35, %v2320_v42  ;;  %v2212_v9 = vadd.f32 %v2179_v51, %v2073_v62  ;;  %v2252_v45 = vpop.f32.mrf.mxu2 }
 0x529   : > { %v2360_v33 = vadd.f32 %v4087_v4, %v2340_v21  ;;  %v2285_v3 = vadd.f32 %v2252_v45, %v2212_v9 }
 0x52b   : > { %2376 = vst [vmem:[%s4093_s19 + $0x20] sm:$0xff] %v2360_v33  ;;  %v2305_v61 = vadd.f32 %v4075_v39, %v2285_v3 }
 0x52d   : > { %v2321_v53 = vmax.f32 %v2305_v61, 0.0  ;;  %v2093_v61 = vpop.f32.mrf.mxu3 }
 0x52e   : > { %v2182_v19 = vpop.f32.mrf.mxu1 }
 0x52f   : > { %v2341_v12 = vmul.f32 %v4081_v35, %v2321_v53  ;;  %v2213_v6 = vadd.f32 %v2182_v19, %v2076_v2  ;;  %v2255_v8 = vpop.f32.mrf.mxu2 }
 0x531   : > { %v2361_v15 = vadd.f32 %v4087_v4, %v2341_v12  ;;  %v2286_v23 = vadd.f32 %v2255_v8, %v2213_v6 }
 0x533   : > { %2377 = vst [vmem:[%s4093_s19 + $0x28] sm:$0xff] %v2361_v15  ;;  %v2306_v37 = vadd.f32 %v4075_v39, %v2286_v23 }
 0x535   : > { %v2322_v56 = vmax.f32 %v2306_v37, 0.0 }
 0x536   : > { %v2184_v43 = vpop.f32.mrf.mxu1 }
 0x537   : > { %v2342_v29 = vmul.f32 %v4081_v35, %v2322_v56  ;;  %v2214_v47 = vadd.f32 %v2184_v43, %v2078_v11  ;;  %v2257_v38 = vpop.f32.mrf.mxu2  ;;  %v2096_v56 = vpop.f32.mrf.mxu3 }
 0x539   : > { %v2362_v1 = vadd.f32 %v4087_v4, %v2342_v29  ;;  %v2287_v13 = vadd.f32 %v2257_v38, %v2214_v47 }
 0x53b   : > { %2378 = vst [vmem:[%s4093_s19 + $0x30] sm:$0xff] %v2362_v1  ;;  %v2307_v41 = vadd.f32 %v4075_v39, %v2287_v13 }
 0x53d   : > { %v2323_v26 = vmax.f32 %v2307_v41, 0.0 }
 0x53e   : > { %v2187_v24 = vpop.f32.mrf.mxu1 }
 0x53f   : > { %v2343_v40 = vmul.f32 %v4081_v35, %v2323_v26  ;;  %v2215_v59 = vadd.f32 %v2187_v24, %v2081_v18  ;;  %v2260_v50 = vpop.f32.mrf.mxu2  ;;  %v2098_v24 = vpop.f32.mrf.mxu3 }
 0x541   : > { %v2363_v48 = vadd.f32 %v4087_v4, %v2343_v40  ;;  %v2288_v36 = vadd.f32 %v2260_v50, %v2215_v59 }
 0x543   : > { %2379 = vst [vmem:[%s4093_s19 + $0x38] sm:$0xff] %v2363_v48  ;;  %v2308_v54 = vadd.f32 %v4075_v39, %v2288_v36 }
 0x545   : > { %v2324_v63 = vmax.f32 %v2308_v54, 0.0 }
 0x546   : > { %v2189_v22 = vpop.f32.mrf.mxu1 }
 0x547   : > { %v2344_v32 = vmul.f32 %v4081_v35, %v2324_v63  ;;  %v2216_v46 = vadd.f32 %v2189_v22, %v2083_v49  ;;  %v2262_v52 = vpop.f32.mrf.mxu2 }
 0x549   : > { %v2364_v34 = vadd.f32 %v4087_v4, %v2344_v32  ;;  %v2289_v62 = vadd.f32 %v2262_v52, %v2216_v46 }
 0x54b   : > { %2380 = vst [vmem:[%s4093_s19 + $0x40] sm:$0xff] %v2364_v34  ;;  %v2309_v58 = vadd.f32 %v4075_v39, %v2289_v62 }
 0x54d   : > { %v2325_v5 = vmax.f32 %v2309_v58, 0.0 }
 0x54e   : > { %v2192_v25 = vpop.f32.mrf.mxu1 }
 0x54f   : > { %v2345_v28 = vmul.f32 %v4081_v35, %v2325_v5  ;;  %v2217_v31 = vadd.f32 %v2192_v25, %v2086_v7  ;;  %v2265_v27 = vpop.f32.mrf.mxu2 }
 0x551   : > { %v2365_v44 = vadd.f32 %v4087_v4, %v2345_v28  ;;  %v2290_v10 = vadd.f32 %v2265_v27, %v2217_v31 }
 0x553   : > { %2381 = vst [vmem:[%s4093_s19 + $0x48] sm:$0xff] %v2365_v44  ;;  %v2310_v2 = vadd.f32 %v4075_v39, %v2290_v10 }
 0x555   : > { %v2326_v55 = vmax.f32 %v2310_v2, 0.0 }
 0x556   : > { %v2194_v57 = vpop.f32.mrf.mxu1 }
 0x557   : > { %v2346_v17 = vmul.f32 %v4081_v35, %v2326_v55  ;;  %v2218_v16 = vadd.f32 %v2194_v57, %v2088_v60  ;;  %v2267_v30 = vpop.f32.mrf.mxu2 }
 0x559   : > { %v2366_v14 = vadd.f32 %v4087_v4, %v2346_v17  ;;  %v2291_v20 = vadd.f32 %v2267_v30, %v2218_v16 }
 0x55b   : > { %2382 = vst [vmem:[%s4093_s19 + $0x50] sm:$0xff] %v2366_v14  ;;  %v2311_v42 = vadd.f32 %v4075_v39, %v2291_v20 }
 0x55d   : > { %v2327_v11 = vmax.f32 %v2311_v42, 0.0 }
 0x55e   : > { %v2197_v51 = vpop.f32.mrf.mxu1 }
 0x55f   : > { %v2347_v21 = vmul.f32 %v4081_v35, %v2327_v11  ;;  %v2219_v9 = vadd.f32 %v2197_v51, %v2091_v0  ;;  %v2270_v45 = vpop.f32.mrf.mxu2 }
 0x561   : > { %v2367_v33 = vadd.f32 %v4087_v4, %v2347_v21  ;;  %v2292_v3 = vadd.f32 %v2270_v45, %v2219_v9 }
 0x563   : > { %2383 = vst [vmem:[%s4093_s19 + $0x58] sm:$0xff] %v2367_v33  ;;  %v2312_v53 = vadd.f32 %v4075_v39, %v2292_v3 }
 0x565   : > { %v2328_v19 = vmax.f32 %v2312_v53, 0.0 }
 0x566   : > { %v2199_v12 = vpop.f32.mrf.mxu1 }
 0x567   : > { %v2348_v6 = vmul.f32 %v4081_v35, %v2328_v19  ;;  %v2220_v8 = vadd.f32 %v2199_v12, %v2093_v61  ;;  %v2272_v18 = vpop.f32.mrf.mxu2 }
 0x569   : > { %v2368_v15 = vadd.f32 %v4087_v4, %v2348_v6  ;;  %v2293_v23 = vadd.f32 %v2272_v18, %v2220_v8 }
 0x56b   : > { %2384 = vst [vmem:[%s4093_s19 + $0x60] sm:$0xff] %v2368_v15  ;;  %v2313_v37 = vadd.f32 %v4075_v39, %v2293_v23 }
 0x56d   : > { %v2329_v43 = vmax.f32 %v2313_v37, 0.0 }
 0x56e   : > { %v2202_v29 = vpop.f32.mrf.mxu1 }
 0x56f   : > { %v2349_v47 = vmul.f32 %v4081_v35, %v2329_v43  ;;  %v2221_v38 = vadd.f32 %v2202_v29, %v2096_v56  ;;  %v2275_v1 = vpop.f32.mrf.mxu2 }
 0x571   : > { %v2369_v13 = vadd.f32 %v4087_v4, %v2349_v47  ;;  %v2294_v49 = vadd.f32 %v2275_v1, %v2221_v38 }
 0x573   : > { %2385 = vst [vmem:[%s4093_s19 + $0x68] sm:$0xff] %v2369_v13  ;;  %v2314_v41 = vadd.f32 %v4075_v39, %v2294_v49 }
 0x575   : > { %v2330_v26 = vmax.f32 %v2314_v41, 0.0 }
 0x576   : > { %v2204_v40 = vpop.f32.mrf.mxu1 }
 0x577   : > { %v2350_v59 = vmul.f32 %v4081_v35, %v2330_v26  ;;  %v2222_v50 = vadd.f32 %v2204_v40, %v2098_v24  ;;  %v2277_v48 = vpop.f32.mrf.mxu2 }
 0x579   : > { %v2370_v36 = vadd.f32 %v4087_v4, %v2350_v59  ;;  %v2295_v54 = vadd.f32 %v2277_v48, %v2222_v50 }
 0x57b   : > { %2386 = vst [vmem:[%s4093_s19 + $0x70] sm:$0xff] %v2370_v36  ;;  %v2315_v7 = vadd.f32 %v4075_v39, %v2295_v54 }
 0x57d   : > { %v2331_v63 = vmax.f32 %v2315_v7, 0.0 }
 0x57f   : > { %v2351_v22 = vmul.f32 %v4081_v35, %v2331_v63 }
 0x581   : > { %v2371_v32 = vadd.f32 %v4087_v4, %v2351_v22 }
 0x583   : > { %2387 = vst [vmem:[%s4093_s19 + $0x78] sm:$0xff] %v2371_v32 }
 0x584 PF: > { %s25_s18 = sadd.s32 1, %s3010_s18  }
 0x585   : > { %p22_p5 = scmp.ge.s32.totalorder %s25_s18, 4  }
 0x587   :  { %24 = sbr.rel (!%p22_p5) target bundleno = 1 (0x1), region = 113 }

</bundles_post_ra>
